<compile_context>
chip_gen: v7x
topology: tpu7x:2x2x1
jax: 0.10.0
libtpu: 0.0.40
codegen_flags: <defaults>
</compile_context>

<pallas_src>
import numpy as np
import jax
import jax.numpy as jnp
from jax import lax
from jax.experimental import pallas as pl
from jax.experimental.pallas import tpu as pltpu


def _make_kernel(radius: float, nsample: int, n_sub: int, call: int, callp: int):
    r2 = float(radius) * float(radius)

    def kernel(new_ref, xyzt_ref, tbl_ref, out_ref):
        # new_ref  : (1, TM, 3)          f32  centers tile (point-major)
        # xyzt_ref : (1, 3, N)           f32  all points, channel-major (for distances)
        # tbl_ref  : (1, 2*callp, N)     bf16 stacked [hi; lo] gather table, channel-major
        # out_ref  : (1, call, J)        f32  J = nsample*TM, column j = m_local*nsample + s
        TM = new_ref.shape[1]
        N = xyzt_ref.shape[2]
        J = out_ref.shape[2]

        new = new_ref[0]                                   # (TM, 3) f32
        xyz_t = xyzt_ref[0]                                # (3, N)  f32

        # --- squared distances on the VPU: sum_c (q_c - p_c)^2 -> (TM, N) ---
        d2 = jnp.zeros((TM, N), jnp.float32)
        for c in range(3):
            diff = new[:, c:c + 1] - xyz_t[c:c + 1, :]     # (TM,1) - (1,N) broadcast
            d2 = d2 + diff * diff

        lane = lax.broadcasted_iota(jnp.int32, (TM, N), 1).astype(jnp.float32)
        big = float(N)
        masked_lane = jnp.where(d2 < r2, lane, big)        # (TM, N)

        # --- column coordinates of the output tile: j -> (m = j//ns, s = j%ns), exact f32 ---
        jf1 = lax.broadcasted_iota(jnp.int32, (1, J), 1).astype(jnp.float32)
        col_m1 = jnp.floor(jf1 / float(nsample))           # (1, J)  j // nsample (exact)
        col_s1 = jf1 - col_m1 * float(nsample)             # (1, J)  j %  nsample (exact)
        m_rows = lax.broadcasted_iota(jnp.int32, (TM, J), 0).astype(jnp.float32)
        expand = col_m1 == m_rows                          # bool (TM, J): [j//ns == m]

        # --- slot selection: nsample rounds of "smallest remaining in-radius index" ---
        # Per-slot (TM,1) indices are scattered into idx_full (TM, J) so the final flat
        # index row (point-major, slot-minor) needs no reshape/transpose.
        idx_full = jnp.zeros((TM, J), jnp.float32)
        first = None
        for s in range(nsample):                           # nsample is small; static unroll
            min_idx = jnp.min(masked_lane, axis=-1, keepdims=True)   # (TM, 1)
            if s == 0:
                # first in-radius index; 0 if nothing in radius (CUDA zero-init idx)
                first = jnp.where(min_idx < big, min_idx, 0.0)
                idx_s = first
            else:
                idx_s = jnp.where(min_idx < big, min_idx, first)
            idx_full = idx_full + jnp.where(col_s1 == float(s), idx_s, 0.0)
            if s + 1 < nsample:
                masked_lane = jnp.where(masked_lane == min_idx, big, masked_lane)

        # idx_flat[0, j] = index gathered into output column j (exact: single nonzero term)
        idx_flat = jnp.sum(jnp.where(expand, idx_full, 0.0), axis=0, keepdims=True)  # (1, J)

        # --- transposed one-hot (N, J) built once, exact 0/1 in bf16 ---
        n_iota = lax.broadcasted_iota(jnp.int32, (N, J), 0).astype(jnp.float32)
        onehot_t = (n_iota == idx_flat).astype(jnp.bfloat16)

        # --- single fused gather on the MXU: [hi; lo] (2*callp, N) @ (N, J) -> (2*callp, J) ---
        g2 = jnp.dot(tbl_ref[0], onehot_t, preferred_element_type=jnp.float32)
        g = g2[0:callp, :] + g2[callp:2 * callp, :]        # (callp, J), error ~2^-18 relative

        if n_sub > 0:
            # subtract the (exact, VPU-built) centers from the first 3 output rows
            for c in range(3):
                ctr = jnp.sum(jnp.where(expand, new[:, c:c + 1], 0.0),
                              axis=0, keepdims=True)        # (1, J): new[j//ns, c]
                out_ref[0, c:c + 1, :] = (g[c:c + 1, :] - ctr).astype(out_ref.dtype)
            if call > 3:
                out_ref[0, 3:call, :] = g[3:call, :].astype(out_ref.dtype)
        else:
            out_ref[0, :, :] = g[0:call, :].astype(out_ref.dtype)

    return kernel


def _pick_tile_m(npoint: int, nsample: int, tile_m=None):
    if tile_m is not None:
        assert tile_m % 8 == 0 and npoint % tile_m == 0
        return tile_m
    # keep the output lane width (nsample*tile_m) around 256-512 while bounding VMEM
    cap = min(npoint, max(8, min(128, (512 // max(nsample, 1)) // 8 * 8)))
    cands = [t for t in range(8, cap + 1, 8) if npoint % t == 0]
    assert cands, "npoint must be a multiple of 8"
    lane_ok = [t for t in cands if (nsample * t) % 128 == 0 or t == npoint]
    return max(lane_ok) if lane_ok else max(cands)


def query_and_group(radius, nsample, xyz, new_xyz, features=None, use_xyz=True, tile_m=None):
    """xyz (B,N,3), new_xyz (B,npoint,3), features (B,C,N) -> (B, 3+C, npoint, nsample)."""
    B, N, _ = xyz.shape
    npoint = new_xyz.shape[1]
    assert N < (1 << 24), "point indices are carried as f32; need N < 2^24"
    xyz = xyz.astype(jnp.float32)
    new_xyz = new_xyz.astype(jnp.float32)
    xyz_t = jnp.transpose(xyz, (0, 2, 1))                                # (B, 3, N)

    if features is not None:
        features = features.astype(jnp.float32)                         # already channel-major
        if use_xyz:
            tbl_f32 = jnp.concatenate([xyz_t, features], axis=1)        # (B, 3+C, N)
            n_sub = 3
        else:
            tbl_f32 = features
            n_sub = 0
    else:
        assert use_xyz, "Cannot have not features and not use xyz as a feature!"
        tbl_f32 = xyz_t
        n_sub = 3

    call = tbl_f32.shape[1]
    callp = ((call + 7) // 8) * 8                                        # vreg-aligned halves

    # exact hi/lo bf16 split of the gather table (one-hot products are then exact bf16 ops)
    hi = tbl_f32.astype(jnp.bfloat16)
    lo = (tbl_f32 - hi.astype(jnp.float32)).astype(jnp.bfloat16)
    if callp != call:
        zpad = jnp.zeros((B, callp - call, N), jnp.bfloat16)
        hi = jnp.concatenate([hi, zpad], axis=1)
        lo = jnp.concatenate([lo, zpad], axis=1)
    tbl = jnp.concatenate([hi, lo], axis=1)                              # (B, 2*callp, N) bf16

    tile_m = _pick_tile_m(npoint, nsample, tile_m)
    J = nsample * tile_m
    grid = (B, npoint // tile_m)

    # scoped-VMEM budget from the real footprint (double-buffered blocks + in-kernel temps)
    bytes_est = (
        2 * (tile_m * 3 * 4 + 3 * N * 4 + 2 * callp * N * 2 + call * J * 4)
        + N * J * 2            # one-hot (bf16)
        + N * J * 4            # iota for the one-hot compare (worst case materialized)
        + 6 * tile_m * N * 4   # d2 / masked_lane / diff temporaries
        + 6 * tile_m * J * 4   # expand / idx_full temporaries
        + 2 * callp * J * 4    # gather result
    )
    vmem_limit = int(min(64 * 2 ** 20, max(16 * 2 ** 20, int(bytes_est * 1.5))))

    kernel = _make_kernel(radius, nsample, n_sub, call, callp)

    out = pl.pallas_call(
        kernel,
        out_shape=jax.ShapeDtypeStruct((B, call, npoint * nsample), jnp.float32),
        grid_spec=pltpu.PrefetchScalarGridSpec(
            num_scalar_prefetch=0,
            grid=grid,
            in_specs=[
                pl.BlockSpec((1, tile_m, 3), lambda b, mi: (b, mi, 0)),
                pl.BlockSpec((1, 3, N), lambda b, mi: (b, 0, 0)),
                pl.BlockSpec((1, 2 * callp, N), lambda b, mi: (b, 0, 0)),
            ],
            out_specs=pl.BlockSpec((1, call, J), lambda b, mi: (b, 0, mi)),
        ),
        compiler_params=pltpu.CompilerParams(
            dimension_semantics=("parallel", "parallel"),
            vmem_limit_bytes=vmem_limit),
    )(new_xyz, xyz_t, tbl)

    # output is already channel-major and point-major/slot-minor: reshape is metadata only
    return out.reshape(B, call, npoint, nsample)


def _reference(radius, nsample, xyz, new_xyz, features, use_xyz=True):
    """Pure-numpy re-implementation of the CUDA ball_query + group semantics."""
    B, N, _ = xyz.shape
    npoint = new_xyz.shape[1]
    r2 = radius * radius
    idx = np.zeros((B, npoint, nsample), dtype=np.int64)
    for b in range(B):
        for m in range(npoint):
            cnt = 0
            for k in range(N):
                d2 = np.sum((xyz[b, k] - new_xyz[b, m]) ** 2)
                if d2 < r2:
                    if cnt == 0:
                        idx[b, m, :] = k
                    idx[b, m, cnt] = k
                    cnt += 1
                    if cnt >= nsample:
                        break
    xyz_t = xyz.transpose(0, 2, 1)  # (B, 3, N)
    grouped_xyz = np.stack([xyz_t[b][:, idx[b]] for b in range(B)])        # (B,3,npoint,nsample)
    grouped_xyz = grouped_xyz - new_xyz.transpose(0, 2, 1)[..., None]
    if features is not None:
        grouped_feat = np.stack([features[b][:, idx[b]] for b in range(B)])
        if use_xyz:
            return np.concatenate([grouped_xyz, grouped_feat], axis=1)
        return grouped_feat
    return grouped_xyz


if __name__ == "__main__":
    B, N, npoint, nsample, C = 2, 64, 16, 16, 4
    radius = 0.35

    key = jax.random.PRNGKey(0)
    k1, k2 = jax.random.split(key, 2)
    xyz = jax.random.uniform(k1, (B, N, 3), dtype=jnp.float32)     # points in the unit cube
    new_xyz = xyz[:, :npoint, :]                                   # centers are actual points
    features = jax.random.normal(k2, (B, C, N), dtype=jnp.float32)

    out = query_and_group(radius, nsample, xyz, new_xyz, features, use_xyz=True)
    out = jax.block_until_ready(out)

    ref = _reference(radius, nsample, np.asarray(xyz), np.asarray(new_xyz),
                     np.asarray(features), use_xyz=True)

    assert out.shape == (B, 3 + C, npoint, nsample), out.shape
    assert np.allclose(np.asarray(out), ref, atol=1e-4, rtol=1e-4), \
        f"max err {np.max(np.abs(np.asarray(out) - ref))}"

    print("KERNEL_OK")
</pallas_src>

<mosaic_0001>
module attributes {stable_mosaic.version = 11 : i64} {
  func.func @kernel(%arg0: i32, %arg1: i32, %arg2: memref<1x16x3xf32, #tpu.memory_space<vmem>>, %arg3: memref<1x3x64xf32, #tpu.memory_space<vmem>>, %arg4: memref<1x16x64xbf16, #tpu.memory_space<vmem>>, %arg5: memref<1x7x256xf32, #tpu.memory_space<vmem>>) attributes {dimension_semantics = [#tpu.dimension_semantics<parallel>, #tpu.dimension_semantics<parallel>], iteration_bounds = array<i64: 2, 1>, scalar_prefetch = 0 : i64, scratch_operands = 0 : i64, tpu.core_type = #tpu.core_type<tc>, window_params = [{transform_indices = @transform_0, window_bounds = array<i64: 1, 16, 3>}, {transform_indices = @transform_1, window_bounds = array<i64: 1, 3, 64>}, {transform_indices = @transform_2, window_bounds = array<i64: 1, 16, 64>}, {transform_indices = @transform_3, window_bounds = array<i64: 1, 7, 256>}]} {
    %c0 = arith.constant 0 : index
    %c0_0 = arith.constant 0 : index
    %c0_1 = arith.constant 0 : index
    %0 = vector.load %arg2[%c0, %c0_0, %c0_1] : memref<1x16x3xf32, #tpu.memory_space<vmem>>, vector<1x16x3xf32>
    %1 = vector.shape_cast %0 : vector<1x16x3xf32> to vector<16x3xf32>
    %c0_2 = arith.constant 0 : index
    %c0_3 = arith.constant 0 : index
    %c0_4 = arith.constant 0 : index
    %2 = vector.load %arg3[%c0_2, %c0_3, %c0_4] : memref<1x3x64xf32, #tpu.memory_space<vmem>>, vector<1x3x64xf32>
    %3 = vector.shape_cast %2 : vector<1x3x64xf32> to vector<3x64xf32>
    %cst = arith.constant 0.000000e+00 : f32
    %4 = vector.broadcast %cst : f32 to vector<16x64xf32>
    %5 = vector.extract_strided_slice %1 {offsets = [0, 0], sizes = [16, 1], strides = [1, 1]} : vector<16x3xf32> to vector<16x1xf32>
    %6 = vector.extract_strided_slice %3 {offsets = [0, 0], sizes = [1, 64], strides = [1, 1]} : vector<3x64xf32> to vector<1x64xf32>
    %7 = vector.broadcast %5 : vector<16x1xf32> to vector<16x64xf32>
    %8 = vector.broadcast %6 : vector<1x64xf32> to vector<16x64xf32>
    %9 = arith.subf %7, %8 : vector<16x64xf32>
    %10 = arith.mulf %9, %9 : vector<16x64xf32>
    %11 = arith.addf %4, %10 : vector<16x64xf32>
    %12 = vector.extract_strided_slice %1 {offsets = [0, 1], sizes = [16, 1], strides = [1, 1]} : vector<16x3xf32> to vector<16x1xf32>
    %13 = vector.extract_strided_slice %3 {offsets = [1, 0], sizes = [1, 64], strides = [1, 1]} : vector<3x64xf32> to vector<1x64xf32>
    %14 = vector.broadcast %12 : vector<16x1xf32> to vector<16x64xf32>
    %15 = vector.broadcast %13 : vector<1x64xf32> to vector<16x64xf32>
    %16 = arith.subf %14, %15 : vector<16x64xf32>
    %17 = arith.mulf %16, %16 : vector<16x64xf32>
    %18 = arith.addf %11, %17 : vector<16x64xf32>
    %19 = vector.extract_strided_slice %1 {offsets = [0, 2], sizes = [16, 1], strides = [1, 1]} : vector<16x3xf32> to vector<16x1xf32>
    %20 = vector.extract_strided_slice %3 {offsets = [2, 0], sizes = [1, 64], strides = [1, 1]} : vector<3x64xf32> to vector<1x64xf32>
    %21 = vector.broadcast %19 : vector<16x1xf32> to vector<16x64xf32>
    %22 = vector.broadcast %20 : vector<1x64xf32> to vector<16x64xf32>
    %23 = arith.subf %21, %22 : vector<16x64xf32>
    %24 = arith.mulf %23, %23 : vector<16x64xf32>
    %25 = arith.addf %18, %24 : vector<16x64xf32>
    %26 = tpu.iota {dimensions = array<i32: 1>} : vector<16x64xi32>
    %27 = arith.sitofp %26 : vector<16x64xi32> to vector<16x64xf32>
    %cst_5 = arith.constant 1.225000e-01 : f32
    %28 = vector.broadcast %cst_5 : f32 to vector<16x64xf32>
    %29 = arith.cmpf olt, %25, %28 : vector<16x64xf32>
    %cst_6 = arith.constant 6.400000e+01 : f32
    %30 = vector.broadcast %cst_6 : f32 to vector<16x64xf32>
    %31 = arith.select %29, %27, %30 : vector<16x64xi1>, vector<16x64xf32>
    %32 = tpu.iota {dimensions = array<i32: 1>} : vector<1x256xi32>
    %33 = arith.sitofp %32 : vector<1x256xi32> to vector<1x256xf32>
    %cst_7 = arith.constant 1.600000e+01 : f32
    %34 = vector.broadcast %cst_7 : f32 to vector<1x256xf32>
    %35 = arith.divf %33, %34 : vector<1x256xf32>
    %36 = math.floor %35 : vector<1x256xf32>
    %cst_8 = arith.constant 1.600000e+01 : f32
    %37 = vector.broadcast %cst_8 : f32 to vector<1x256xf32>
    %38 = arith.mulf %36, %37 : vector<1x256xf32>
    %39 = arith.subf %33, %38 : vector<1x256xf32>
    %40 = tpu.iota {dimensions = array<i32: 0>} : vector<16x256xi32>
    %41 = arith.sitofp %40 : vector<16x256xi32> to vector<16x256xf32>
    %42 = vector.broadcast %36 : vector<1x256xf32> to vector<16x256xf32>
    %43 = arith.cmpf oeq, %42, %41 : vector<16x256xf32>
    %cst_9 = arith.constant 0.000000e+00 : f32
    %44 = vector.broadcast %cst_9 : f32 to vector<16x256xf32>
    %cst_10 = arith.constant dense<0x7F800000> : vector<16xf32>
    %45 = vector.multi_reduction <minimumf>, %31, %cst_10 [1] : vector<16x64xf32> to vector<16xf32>
    %46 = vector.shape_cast %45 : vector<16xf32> to vector<16x1xf32>
    %cst_11 = arith.constant 6.400000e+01 : f32
    %47 = vector.broadcast %cst_11 : f32 to vector<16x1xf32>
    %48 = arith.cmpf olt, %46, %47 : vector<16x1xf32>
    %cst_12 = arith.constant 0.000000e+00 : f32
    %49 = vector.broadcast %cst_12 : f32 to vector<16x1xf32>
    %50 = arith.select %48, %46, %49 : vector<16x1xi1>, vector<16x1xf32>
    %cst_13 = arith.constant 0.000000e+00 : f32
    %51 = vector.broadcast %cst_13 : f32 to vector<1x256xf32>
    %52 = arith.cmpf oeq, %39, %51 : vector<1x256xf32>
    %cst_14 = arith.constant 0.000000e+00 : f32
    %53 = vector.shape_cast %52 : vector<1x256xi1> to vector<1x256xi1>
    %54 = vector.broadcast %53 : vector<1x256xi1> to vector<16x256xi1>
    %55 = vector.shape_cast %50 : vector<16x1xf32> to vector<16x1xf32>
    %56 = vector.broadcast %55 : vector<16x1xf32> to vector<16x256xf32>
    %57 = vector.broadcast %cst_14 : f32 to vector<16x256xf32>
    %58 = arith.select %54, %56, %57 : vector<16x256xi1>, vector<16x256xf32>
    %59 = arith.addf %44, %58 : vector<16x256xf32>
    %60 = vector.broadcast %46 : vector<16x1xf32> to vector<16x64xf32>
    %61 = arith.cmpf oeq, %31, %60 : vector<16x64xf32>
    %cst_15 = arith.constant 6.400000e+01 : f32
    %62 = vector.broadcast %cst_15 : f32 to vector<16x64xf32>
    %63 = arith.select %61, %62, %31 : vector<16x64xi1>, vector<16x64xf32>
    %cst_16 = arith.constant dense<0x7F800000> : vector<16xf32>
    %64 = vector.multi_reduction <minimumf>, %63, %cst_16 [1] : vector<16x64xf32> to vector<16xf32>
    %65 = vector.shape_cast %64 : vector<16xf32> to vector<16x1xf32>
    %cst_17 = arith.constant 6.400000e+01 : f32
    %66 = vector.broadcast %cst_17 : f32 to vector<16x1xf32>
    %67 = arith.cmpf olt, %65, %66 : vector<16x1xf32>
    %68 = arith.select %67, %65, %50 : vector<16x1xi1>, vector<16x1xf32>
    %cst_18 = arith.constant 1.000000e+00 : f32
    %69 = vector.broadcast %cst_18 : f32 to vector<1x256xf32>
    %70 = arith.cmpf oeq, %39, %69 : vector<1x256xf32>
    %cst_19 = arith.constant 0.000000e+00 : f32
    %71 = vector.shape_cast %70 : vector<1x256xi1> to vector<1x256xi1>
    %72 = vector.broadcast %71 : vector<1x256xi1> to vector<16x256xi1>
    %73 = vector.shape_cast %68 : vector<16x1xf32> to vector<16x1xf32>
    %74 = vector.broadcast %73 : vector<16x1xf32> to vector<16x256xf32>
    %75 = vector.broadcast %cst_19 : f32 to vector<16x256xf32>
    %76 = arith.select %72, %74, %75 : vector<16x256xi1>, vector<16x256xf32>
    %77 = arith.addf %59, %76 : vector<16x256xf32>
    %78 = vector.broadcast %65 : vector<16x1xf32> to vector<16x64xf32>
    %79 = arith.cmpf oeq, %63, %78 : vector<16x64xf32>
    %cst_20 = arith.constant 6.400000e+01 : f32
    %80 = vector.broadcast %cst_20 : f32 to vector<16x64xf32>
    %81 = arith.select %79, %80, %63 : vector<16x64xi1>, vector<16x64xf32>
    %cst_21 = arith.constant dense<0x7F800000> : vector<16xf32>
    %82 = vector.multi_reduction <minimumf>, %81, %cst_21 [1] : vector<16x64xf32> to vector<16xf32>
    %83 = vector.shape_cast %82 : vector<16xf32> to vector<16x1xf32>
    %cst_22 = arith.constant 6.400000e+01 : f32
    %84 = vector.broadcast %cst_22 : f32 to vector<16x1xf32>
    %85 = arith.cmpf olt, %83, %84 : vector<16x1xf32>
    %86 = arith.select %85, %83, %50 : vector<16x1xi1>, vector<16x1xf32>
    %cst_23 = arith.constant 2.000000e+00 : f32
    %87 = vector.broadcast %cst_23 : f32 to vector<1x256xf32>
    %88 = arith.cmpf oeq, %39, %87 : vector<1x256xf32>
    %cst_24 = arith.constant 0.000000e+00 : f32
    %89 = vector.shape_cast %88 : vector<1x256xi1> to vector<1x256xi1>
    %90 = vector.broadcast %89 : vector<1x256xi1> to vector<16x256xi1>
    %91 = vector.shape_cast %86 : vector<16x1xf32> to vector<16x1xf32>
    %92 = vector.broadcast %91 : vector<16x1xf32> to vector<16x256xf32>
    %93 = vector.broadcast %cst_24 : f32 to vector<16x256xf32>
    %94 = arith.select %90, %92, %93 : vector<16x256xi1>, vector<16x256xf32>
    %95 = arith.addf %77, %94 : vector<16x256xf32>
    %96 = vector.broadcast %83 : vector<16x1xf32> to vector<16x64xf32>
    %97 = arith.cmpf oeq, %81, %96 : vector<16x64xf32>
    %cst_25 = arith.constant 6.400000e+01 : f32
    %98 = vector.broadcast %cst_25 : f32 to vector<16x64xf32>
    %99 = arith.select %97, %98, %81 : vector<16x64xi1>, vector<16x64xf32>
    %cst_26 = arith.constant dense<0x7F800000> : vector<16xf32>
    %100 = vector.multi_reduction <minimumf>, %99, %cst_26 [1] : vector<16x64xf32> to vector<16xf32>
    %101 = vector.shape_cast %100 : vector<16xf32> to vector<16x1xf32>
    %cst_27 = arith.constant 6.400000e+01 : f32
    %102 = vector.broadcast %cst_27 : f32 to vector<16x1xf32>
    %103 = arith.cmpf olt, %101, %102 : vector<16x1xf32>
    %104 = arith.select %103, %101, %50 : vector<16x1xi1>, vector<16x1xf32>
    %cst_28 = arith.constant 3.000000e+00 : f32
    %105 = vector.broadcast %cst_28 : f32 to vector<1x256xf32>
    %106 = arith.cmpf oeq, %39, %105 : vector<1x256xf32>
    %cst_29 = arith.constant 0.000000e+00 : f32
    %107 = vector.shape_cast %106 : vector<1x256xi1> to vector<1x256xi1>
    %108 = vector.broadcast %107 : vector<1x256xi1> to vector<16x256xi1>
    %109 = vector.shape_cast %104 : vector<16x1xf32> to vector<16x1xf32>
    %110 = vector.broadcast %109 : vector<16x1xf32> to vector<16x256xf32>
    %111 = vector.broadcast %cst_29 : f32 to vector<16x256xf32>
    %112 = arith.select %108, %110, %111 : vector<16x256xi1>, vector<16x256xf32>
    %113 = arith.addf %95, %112 : vector<16x256xf32>
    %114 = vector.broadcast %101 : vector<16x1xf32> to vector<16x64xf32>
    %115 = arith.cmpf oeq, %99, %114 : vector<16x64xf32>
    %cst_30 = arith.constant 6.400000e+01 : f32
    %116 = vector.broadcast %cst_30 : f32 to vector<16x64xf32>
    %117 = arith.select %115, %116, %99 : vector<16x64xi1>, vector<16x64xf32>
    %cst_31 = arith.constant dense<0x7F800000> : vector<16xf32>
    %118 = vector.multi_reduction <minimumf>, %117, %cst_31 [1] : vector<16x64xf32> to vector<16xf32>
    %119 = vector.shape_cast %118 : vector<16xf32> to vector<16x1xf32>
    %cst_32 = arith.constant 6.400000e+01 : f32
    %120 = vector.broadcast %cst_32 : f32 to vector<16x1xf32>
    %121 = arith.cmpf olt, %119, %120 : vector<16x1xf32>
    %122 = arith.select %121, %119, %50 : vector<16x1xi1>, vector<16x1xf32>
    %cst_33 = arith.constant 4.000000e+00 : f32
    %123 = vector.broadcast %cst_33 : f32 to vector<1x256xf32>
    %124 = arith.cmpf oeq, %39, %123 : vector<1x256xf32>
    %cst_34 = arith.constant 0.000000e+00 : f32
    %125 = vector.shape_cast %124 : vector<1x256xi1> to vector<1x256xi1>
    %126 = vector.broadcast %125 : vector<1x256xi1> to vector<16x256xi1>
    %127 = vector.shape_cast %122 : vector<16x1xf32> to vector<16x1xf32>
    %128 = vector.broadcast %127 : vector<16x1xf32> to vector<16x256xf32>
    %129 = vector.broadcast %cst_34 : f32 to vector<16x256xf32>
    %130 = arith.select %126, %128, %129 : vector<16x256xi1>, vector<16x256xf32>
    %131 = arith.addf %113, %130 : vector<16x256xf32>
    %132 = vector.broadcast %119 : vector<16x1xf32> to vector<16x64xf32>
    %133 = arith.cmpf oeq, %117, %132 : vector<16x64xf32>
    %cst_35 = arith.constant 6.400000e+01 : f32
    %134 = vector.broadcast %cst_35 : f32 to vector<16x64xf32>
    %135 = arith.select %133, %134, %117 : vector<16x64xi1>, vector<16x64xf32>
    %cst_36 = arith.constant dense<0x7F800000> : vector<16xf32>
    %136 = vector.multi_reduction <minimumf>, %135, %cst_36 [1] : vector<16x64xf32> to vector<16xf32>
    %137 = vector.shape_cast %136 : vector<16xf32> to vector<16x1xf32>
    %cst_37 = arith.constant 6.400000e+01 : f32
    %138 = vector.broadcast %cst_37 : f32 to vector<16x1xf32>
    %139 = arith.cmpf olt, %137, %138 : vector<16x1xf32>
    %140 = arith.select %139, %137, %50 : vector<16x1xi1>, vector<16x1xf32>
    %cst_38 = arith.constant 5.000000e+00 : f32
    %141 = vector.broadcast %cst_38 : f32 to vector<1x256xf32>
    %142 = arith.cmpf oeq, %39, %141 : vector<1x256xf32>
    %cst_39 = arith.constant 0.000000e+00 : f32
    %143 = vector.shape_cast %142 : vector<1x256xi1> to vector<1x256xi1>
    %144 = vector.broadcast %143 : vector<1x256xi1> to vector<16x256xi1>
    %145 = vector.shape_cast %140 : vector<16x1xf32> to vector<16x1xf32>
    %146 = vector.broadcast %145 : vector<16x1xf32> to vector<16x256xf32>
    %147 = vector.broadcast %cst_39 : f32 to vector<16x256xf32>
    %148 = arith.select %144, %146, %147 : vector<16x256xi1>, vector<16x256xf32>
    %149 = arith.addf %131, %148 : vector<16x256xf32>
    %150 = vector.broadcast %137 : vector<16x1xf32> to vector<16x64xf32>
    %151 = arith.cmpf oeq, %135, %150 : vector<16x64xf32>
    %cst_40 = arith.constant 6.400000e+01 : f32
    %152 = vector.broadcast %cst_40 : f32 to vector<16x64xf32>
    %153 = arith.select %151, %152, %135 : vector<16x64xi1>, vector<16x64xf32>
    %cst_41 = arith.constant dense<0x7F800000> : vector<16xf32>
    %154 = vector.multi_reduction <minimumf>, %153, %cst_41 [1] : vector<16x64xf32> to vector<16xf32>
    %155 = vector.shape_cast %154 : vector<16xf32> to vector<16x1xf32>
    %cst_42 = arith.constant 6.400000e+01 : f32
    %156 = vector.broadcast %cst_42 : f32 to vector<16x1xf32>
    %157 = arith.cmpf olt, %155, %156 : vector<16x1xf32>
    %158 = arith.select %157, %155, %50 : vector<16x1xi1>, vector<16x1xf32>
    %cst_43 = arith.constant 6.000000e+00 : f32
    %159 = vector.broadcast %cst_43 : f32 to vector<1x256xf32>
    %160 = arith.cmpf oeq, %39, %159 : vector<1x256xf32>
    %cst_44 = arith.constant 0.000000e+00 : f32
    %161 = vector.shape_cast %160 : vector<1x256xi1> to vector<1x256xi1>
    %162 = vector.broadcast %161 : vector<1x256xi1> to vector<16x256xi1>
    %163 = vector.shape_cast %158 : vector<16x1xf32> to vector<16x1xf32>
    %164 = vector.broadcast %163 : vector<16x1xf32> to vector<16x256xf32>
    %165 = vector.broadcast %cst_44 : f32 to vector<16x256xf32>
    %166 = arith.select %162, %164, %165 : vector<16x256xi1>, vector<16x256xf32>
    %167 = arith.addf %149, %166 : vector<16x256xf32>
    %168 = vector.broadcast %155 : vector<16x1xf32> to vector<16x64xf32>
    %169 = arith.cmpf oeq, %153, %168 : vector<16x64xf32>
    %cst_45 = arith.constant 6.400000e+01 : f32
    %170 = vector.broadcast %cst_45 : f32 to vector<16x64xf32>
    %171 = arith.select %169, %170, %153 : vector<16x64xi1>, vector<16x64xf32>
    %cst_46 = arith.constant dense<0x7F800000> : vector<16xf32>
    %172 = vector.multi_reduction <minimumf>, %171, %cst_46 [1] : vector<16x64xf32> to vector<16xf32>
    %173 = vector.shape_cast %172 : vector<16xf32> to vector<16x1xf32>
    %cst_47 = arith.constant 6.400000e+01 : f32
    %174 = vector.broadcast %cst_47 : f32 to vector<16x1xf32>
    %175 = arith.cmpf olt, %173, %174 : vector<16x1xf32>
    %176 = arith.select %175, %173, %50 : vector<16x1xi1>, vector<16x1xf32>
    %cst_48 = arith.constant 7.000000e+00 : f32
    %177 = vector.broadcast %cst_48 : f32 to vector<1x256xf32>
    %178 = arith.cmpf oeq, %39, %177 : vector<1x256xf32>
    %cst_49 = arith.constant 0.000000e+00 : f32
    %179 = vector.shape_cast %178 : vector<1x256xi1> to vector<1x256xi1>
    %180 = vector.broadcast %179 : vector<1x256xi1> to vector<16x256xi1>
    %181 = vector.shape_cast %176 : vector<16x1xf32> to vector<16x1xf32>
    %182 = vector.broadcast %181 : vector<16x1xf32> to vector<16x256xf32>
    %183 = vector.broadcast %cst_49 : f32 to vector<16x256xf32>
    %184 = arith.select %180, %182, %183 : vector<16x256xi1>, vector<16x256xf32>
    %185 = arith.addf %167, %184 : vector<16x256xf32>
    %186 = vector.broadcast %173 : vector<16x1xf32> to vector<16x64xf32>
    %187 = arith.cmpf oeq, %171, %186 : vector<16x64xf32>
    %cst_50 = arith.constant 6.400000e+01 : f32
    %188 = vector.broadcast %cst_50 : f32 to vector<16x64xf32>
    %189 = arith.select %187, %188, %171 : vector<16x64xi1>, vector<16x64xf32>
    %cst_51 = arith.constant dense<0x7F800000> : vector<16xf32>
    %190 = vector.multi_reduction <minimumf>, %189, %cst_51 [1] : vector<16x64xf32> to vector<16xf32>
    %191 = vector.shape_cast %190 : vector<16xf32> to vector<16x1xf32>
    %cst_52 = arith.constant 6.400000e+01 : f32
    %192 = vector.broadcast %cst_52 : f32 to vector<16x1xf32>
    %193 = arith.cmpf olt, %191, %192 : vector<16x1xf32>
    %194 = arith.select %193, %191, %50 : vector<16x1xi1>, vector<16x1xf32>
    %cst_53 = arith.constant 8.000000e+00 : f32
    %195 = vector.broadcast %cst_53 : f32 to vector<1x256xf32>
    %196 = arith.cmpf oeq, %39, %195 : vector<1x256xf32>
    %cst_54 = arith.constant 0.000000e+00 : f32
    %197 = vector.shape_cast %196 : vector<1x256xi1> to vector<1x256xi1>
    %198 = vector.broadcast %197 : vector<1x256xi1> to vector<16x256xi1>
    %199 = vector.shape_cast %194 : vector<16x1xf32> to vector<16x1xf32>
    %200 = vector.broadcast %199 : vector<16x1xf32> to vector<16x256xf32>
    %201 = vector.broadcast %cst_54 : f32 to vector<16x256xf32>
    %202 = arith.select %198, %200, %201 : vector<16x256xi1>, vector<16x256xf32>
    %203 = arith.addf %185, %202 : vector<16x256xf32>
    %204 = vector.broadcast %191 : vector<16x1xf32> to vector<16x64xf32>
    %205 = arith.cmpf oeq, %189, %204 : vector<16x64xf32>
    %cst_55 = arith.constant 6.400000e+01 : f32
    %206 = vector.broadcast %cst_55 : f32 to vector<16x64xf32>
    %207 = arith.select %205, %206, %189 : vector<16x64xi1>, vector<16x64xf32>
    %cst_56 = arith.constant dense<0x7F800000> : vector<16xf32>
    %208 = vector.multi_reduction <minimumf>, %207, %cst_56 [1] : vector<16x64xf32> to vector<16xf32>
    %209 = vector.shape_cast %208 : vector<16xf32> to vector<16x1xf32>
    %cst_57 = arith.constant 6.400000e+01 : f32
    %210 = vector.broadcast %cst_57 : f32 to vector<16x1xf32>
    %211 = arith.cmpf olt, %209, %210 : vector<16x1xf32>
    %212 = arith.select %211, %209, %50 : vector<16x1xi1>, vector<16x1xf32>
    %cst_58 = arith.constant 9.000000e+00 : f32
    %213 = vector.broadcast %cst_58 : f32 to vector<1x256xf32>
    %214 = arith.cmpf oeq, %39, %213 : vector<1x256xf32>
    %cst_59 = arith.constant 0.000000e+00 : f32
    %215 = vector.shape_cast %214 : vector<1x256xi1> to vector<1x256xi1>
    %216 = vector.broadcast %215 : vector<1x256xi1> to vector<16x256xi1>
    %217 = vector.shape_cast %212 : vector<16x1xf32> to vector<16x1xf32>
    %218 = vector.broadcast %217 : vector<16x1xf32> to vector<16x256xf32>
    %219 = vector.broadcast %cst_59 : f32 to vector<16x256xf32>
    %220 = arith.select %216, %218, %219 : vector<16x256xi1>, vector<16x256xf32>
    %221 = arith.addf %203, %220 : vector<16x256xf32>
    %222 = vector.broadcast %209 : vector<16x1xf32> to vector<16x64xf32>
    %223 = arith.cmpf oeq, %207, %222 : vector<16x64xf32>
    %cst_60 = arith.constant 6.400000e+01 : f32
    %224 = vector.broadcast %cst_60 : f32 to vector<16x64xf32>
    %225 = arith.select %223, %224, %207 : vector<16x64xi1>, vector<16x64xf32>
    %cst_61 = arith.constant dense<0x7F800000> : vector<16xf32>
    %226 = vector.multi_reduction <minimumf>, %225, %cst_61 [1] : vector<16x64xf32> to vector<16xf32>
    %227 = vector.shape_cast %226 : vector<16xf32> to vector<16x1xf32>
    %cst_62 = arith.constant 6.400000e+01 : f32
    %228 = vector.broadcast %cst_62 : f32 to vector<16x1xf32>
    %229 = arith.cmpf olt, %227, %228 : vector<16x1xf32>
    %230 = arith.select %229, %227, %50 : vector<16x1xi1>, vector<16x1xf32>
    %cst_63 = arith.constant 1.000000e+01 : f32
    %231 = vector.broadcast %cst_63 : f32 to vector<1x256xf32>
    %232 = arith.cmpf oeq, %39, %231 : vector<1x256xf32>
    %cst_64 = arith.constant 0.000000e+00 : f32
    %233 = vector.shape_cast %232 : vector<1x256xi1> to vector<1x256xi1>
    %234 = vector.broadcast %233 : vector<1x256xi1> to vector<16x256xi1>
    %235 = vector.shape_cast %230 : vector<16x1xf32> to vector<16x1xf32>
    %236 = vector.broadcast %235 : vector<16x1xf32> to vector<16x256xf32>
    %237 = vector.broadcast %cst_64 : f32 to vector<16x256xf32>
    %238 = arith.select %234, %236, %237 : vector<16x256xi1>, vector<16x256xf32>
    %239 = arith.addf %221, %238 : vector<16x256xf32>
    %240 = vector.broadcast %227 : vector<16x1xf32> to vector<16x64xf32>
    %241 = arith.cmpf oeq, %225, %240 : vector<16x64xf32>
    %cst_65 = arith.constant 6.400000e+01 : f32
    %242 = vector.broadcast %cst_65 : f32 to vector<16x64xf32>
    %243 = arith.select %241, %242, %225 : vector<16x64xi1>, vector<16x64xf32>
    %cst_66 = arith.constant dense<0x7F800000> : vector<16xf32>
    %244 = vector.multi_reduction <minimumf>, %243, %cst_66 [1] : vector<16x64xf32> to vector<16xf32>
    %245 = vector.shape_cast %244 : vector<16xf32> to vector<16x1xf32>
    %cst_67 = arith.constant 6.400000e+01 : f32
    %246 = vector.broadcast %cst_67 : f32 to vector<16x1xf32>
    %247 = arith.cmpf olt, %245, %246 : vector<16x1xf32>
    %248 = arith.select %247, %245, %50 : vector<16x1xi1>, vector<16x1xf32>
    %cst_68 = arith.constant 1.100000e+01 : f32
    %249 = vector.broadcast %cst_68 : f32 to vector<1x256xf32>
    %250 = arith.cmpf oeq, %39, %249 : vector<1x256xf32>
    %cst_69 = arith.constant 0.000000e+00 : f32
    %251 = vector.shape_cast %250 : vector<1x256xi1> to vector<1x256xi1>
    %252 = vector.broadcast %251 : vector<1x256xi1> to vector<16x256xi1>
    %253 = vector.shape_cast %248 : vector<16x1xf32> to vector<16x1xf32>
    %254 = vector.broadcast %253 : vector<16x1xf32> to vector<16x256xf32>
    %255 = vector.broadcast %cst_69 : f32 to vector<16x256xf32>
    %256 = arith.select %252, %254, %255 : vector<16x256xi1>, vector<16x256xf32>
    %257 = arith.addf %239, %256 : vector<16x256xf32>
    %258 = vector.broadcast %245 : vector<16x1xf32> to vector<16x64xf32>
    %259 = arith.cmpf oeq, %243, %258 : vector<16x64xf32>
    %cst_70 = arith.constant 6.400000e+01 : f32
    %260 = vector.broadcast %cst_70 : f32 to vector<16x64xf32>
    %261 = arith.select %259, %260, %243 : vector<16x64xi1>, vector<16x64xf32>
    %cst_71 = arith.constant dense<0x7F800000> : vector<16xf32>
    %262 = vector.multi_reduction <minimumf>, %261, %cst_71 [1] : vector<16x64xf32> to vector<16xf32>
    %263 = vector.shape_cast %262 : vector<16xf32> to vector<16x1xf32>
    %cst_72 = arith.constant 6.400000e+01 : f32
    %264 = vector.broadcast %cst_72 : f32 to vector<16x1xf32>
    %265 = arith.cmpf olt, %263, %264 : vector<16x1xf32>
    %266 = arith.select %265, %263, %50 : vector<16x1xi1>, vector<16x1xf32>
    %cst_73 = arith.constant 1.200000e+01 : f32
    %267 = vector.broadcast %cst_73 : f32 to vector<1x256xf32>
    %268 = arith.cmpf oeq, %39, %267 : vector<1x256xf32>
    %cst_74 = arith.constant 0.000000e+00 : f32
    %269 = vector.shape_cast %268 : vector<1x256xi1> to vector<1x256xi1>
    %270 = vector.broadcast %269 : vector<1x256xi1> to vector<16x256xi1>
    %271 = vector.shape_cast %266 : vector<16x1xf32> to vector<16x1xf32>
    %272 = vector.broadcast %271 : vector<16x1xf32> to vector<16x256xf32>
    %273 = vector.broadcast %cst_74 : f32 to vector<16x256xf32>
    %274 = arith.select %270, %272, %273 : vector<16x256xi1>, vector<16x256xf32>
    %275 = arith.addf %257, %274 : vector<16x256xf32>
    %276 = vector.broadcast %263 : vector<16x1xf32> to vector<16x64xf32>
    %277 = arith.cmpf oeq, %261, %276 : vector<16x64xf32>
    %cst_75 = arith.constant 6.400000e+01 : f32
    %278 = vector.broadcast %cst_75 : f32 to vector<16x64xf32>
    %279 = arith.select %277, %278, %261 : vector<16x64xi1>, vector<16x64xf32>
    %cst_76 = arith.constant dense<0x7F800000> : vector<16xf32>
    %280 = vector.multi_reduction <minimumf>, %279, %cst_76 [1] : vector<16x64xf32> to vector<16xf32>
    %281 = vector.shape_cast %280 : vector<16xf32> to vector<16x1xf32>
    %cst_77 = arith.constant 6.400000e+01 : f32
    %282 = vector.broadcast %cst_77 : f32 to vector<16x1xf32>
    %283 = arith.cmpf olt, %281, %282 : vector<16x1xf32>
    %284 = arith.select %283, %281, %50 : vector<16x1xi1>, vector<16x1xf32>
    %cst_78 = arith.constant 1.300000e+01 : f32
    %285 = vector.broadcast %cst_78 : f32 to vector<1x256xf32>
    %286 = arith.cmpf oeq, %39, %285 : vector<1x256xf32>
    %cst_79 = arith.constant 0.000000e+00 : f32
    %287 = vector.shape_cast %286 : vector<1x256xi1> to vector<1x256xi1>
    %288 = vector.broadcast %287 : vector<1x256xi1> to vector<16x256xi1>
    %289 = vector.shape_cast %284 : vector<16x1xf32> to vector<16x1xf32>
    %290 = vector.broadcast %289 : vector<16x1xf32> to vector<16x256xf32>
    %291 = vector.broadcast %cst_79 : f32 to vector<16x256xf32>
    %292 = arith.select %288, %290, %291 : vector<16x256xi1>, vector<16x256xf32>
    %293 = arith.addf %275, %292 : vector<16x256xf32>
    %294 = vector.broadcast %281 : vector<16x1xf32> to vector<16x64xf32>
    %295 = arith.cmpf oeq, %279, %294 : vector<16x64xf32>
    %cst_80 = arith.constant 6.400000e+01 : f32
    %296 = vector.broadcast %cst_80 : f32 to vector<16x64xf32>
    %297 = arith.select %295, %296, %279 : vector<16x64xi1>, vector<16x64xf32>
    %cst_81 = arith.constant dense<0x7F800000> : vector<16xf32>
    %298 = vector.multi_reduction <minimumf>, %297, %cst_81 [1] : vector<16x64xf32> to vector<16xf32>
    %299 = vector.shape_cast %298 : vector<16xf32> to vector<16x1xf32>
    %cst_82 = arith.constant 6.400000e+01 : f32
    %300 = vector.broadcast %cst_82 : f32 to vector<16x1xf32>
    %301 = arith.cmpf olt, %299, %300 : vector<16x1xf32>
    %302 = arith.select %301, %299, %50 : vector<16x1xi1>, vector<16x1xf32>
    %cst_83 = arith.constant 1.400000e+01 : f32
    %303 = vector.broadcast %cst_83 : f32 to vector<1x256xf32>
    %304 = arith.cmpf oeq, %39, %303 : vector<1x256xf32>
    %cst_84 = arith.constant 0.000000e+00 : f32
    %305 = vector.shape_cast %304 : vector<1x256xi1> to vector<1x256xi1>
    %306 = vector.broadcast %305 : vector<1x256xi1> to vector<16x256xi1>
    %307 = vector.shape_cast %302 : vector<16x1xf32> to vector<16x1xf32>
    %308 = vector.broadcast %307 : vector<16x1xf32> to vector<16x256xf32>
    %309 = vector.broadcast %cst_84 : f32 to vector<16x256xf32>
    %310 = arith.select %306, %308, %309 : vector<16x256xi1>, vector<16x256xf32>
    %311 = arith.addf %293, %310 : vector<16x256xf32>
    %312 = vector.broadcast %299 : vector<16x1xf32> to vector<16x64xf32>
    %313 = arith.cmpf oeq, %297, %312 : vector<16x64xf32>
    %cst_85 = arith.constant 6.400000e+01 : f32
    %314 = vector.broadcast %cst_85 : f32 to vector<16x64xf32>
    %315 = arith.select %313, %314, %297 : vector<16x64xi1>, vector<16x64xf32>
    %cst_86 = arith.constant dense<0x7F800000> : vector<16xf32>
    %316 = vector.multi_reduction <minimumf>, %315, %cst_86 [1] : vector<16x64xf32> to vector<16xf32>
    %317 = vector.shape_cast %316 : vector<16xf32> to vector<16x1xf32>
    %cst_87 = arith.constant 6.400000e+01 : f32
    %318 = vector.broadcast %cst_87 : f32 to vector<16x1xf32>
    %319 = arith.cmpf olt, %317, %318 : vector<16x1xf32>
    %320 = arith.select %319, %317, %50 : vector<16x1xi1>, vector<16x1xf32>
    %cst_88 = arith.constant 1.500000e+01 : f32
    %321 = vector.broadcast %cst_88 : f32 to vector<1x256xf32>
    %322 = arith.cmpf oeq, %39, %321 : vector<1x256xf32>
    %cst_89 = arith.constant 0.000000e+00 : f32
    %323 = vector.shape_cast %322 : vector<1x256xi1> to vector<1x256xi1>
    %324 = vector.broadcast %323 : vector<1x256xi1> to vector<16x256xi1>
    %325 = vector.shape_cast %320 : vector<16x1xf32> to vector<16x1xf32>
    %326 = vector.broadcast %325 : vector<16x1xf32> to vector<16x256xf32>
    %327 = vector.broadcast %cst_89 : f32 to vector<16x256xf32>
    %328 = arith.select %324, %326, %327 : vector<16x256xi1>, vector<16x256xf32>
    %329 = arith.addf %311, %328 : vector<16x256xf32>
    %cst_90 = arith.constant 0.000000e+00 : f32
    %330 = vector.broadcast %cst_90 : f32 to vector<16x256xf32>
    %331 = arith.select %43, %329, %330 : vector<16x256xi1>, vector<16x256xf32>
    %cst_91 = arith.constant dense<0.000000e+00> : vector<256xf32>
    %332 = vector.multi_reduction <add>, %331, %cst_91 [0] : vector<16x256xf32> to vector<256xf32>
    %333 = vector.shape_cast %332 : vector<256xf32> to vector<1x256xf32>
    %334 = tpu.iota {dimensions = array<i32: 0>} : vector<64x256xi32>
    %335 = arith.sitofp %334 : vector<64x256xi32> to vector<64x256xf32>
    %336 = vector.broadcast %333 : vector<1x256xf32> to vector<64x256xf32>
    %337 = arith.cmpf oeq, %335, %336 : vector<64x256xf32>
    %338 = arith.extui %337 : vector<64x256xi1> to vector<64x256xi32>
    %339 = arith.sitofp %338 : vector<64x256xi32> to vector<64x256xf32>
    %340 = arith.truncf %339 : vector<64x256xf32> to vector<64x256xbf16>
    %c0_92 = arith.constant 0 : index
    %c0_93 = arith.constant 0 : index
    %c0_94 = arith.constant 0 : index
    %341 = vector.load %arg4[%c0_92, %c0_93, %c0_94] : memref<1x16x64xbf16, #tpu.memory_space<vmem>>, vector<1x16x64xbf16>
    %342 = vector.shape_cast %341 : vector<1x16x64xbf16> to vector<16x64xbf16>
    %cst_95 = arith.constant dense<0.000000e+00> : vector<16x256xf32>
    %343 = tpu.matmul %342, %340, %cst_95 {dimension_numbers = #tpu.dot_dimension_numbers<[1], [0], [0], [1], [0, 0, 1, 1], [], []>} : vector<16x64xbf16>, vector<64x256xbf16>, vector<16x256xf32> -> vector<16x256xf32>
    %344 = vector.extract_strided_slice %343 {offsets = [0, 0], sizes = [8, 256], strides = [1, 1]} : vector<16x256xf32> to vector<8x256xf32>
    %345 = vector.extract_strided_slice %343 {offsets = [8, 0], sizes = [8, 256], strides = [1, 1]} : vector<16x256xf32> to vector<8x256xf32>
    %346 = arith.addf %344, %345 : vector<8x256xf32>
    %347 = vector.extract_strided_slice %1 {offsets = [0, 0], sizes = [16, 1], strides = [1, 1]} : vector<16x3xf32> to vector<16x1xf32>
    %cst_96 = arith.constant 0.000000e+00 : f32
    %348 = vector.shape_cast %347 : vector<16x1xf32> to vector<16x1xf32>
    %349 = vector.broadcast %348 : vector<16x1xf32> to vector<16x256xf32>
    %350 = vector.broadcast %cst_96 : f32 to vector<16x256xf32>
    %351 = arith.select %43, %349, %350 : vector<16x256xi1>, vector<16x256xf32>
    %cst_97 = arith.constant dense<0.000000e+00> : vector<256xf32>
    %352 = vector.multi_reduction <add>, %351, %cst_97 [0] : vector<16x256xf32> to vector<256xf32>
    %353 = vector.shape_cast %352 : vector<256xf32> to vector<1x256xf32>
    %354 = vector.extract_strided_slice %346 {offsets = [0, 0], sizes = [1, 256], strides = [1, 1]} : vector<8x256xf32> to vector<1x256xf32>
    %355 = arith.subf %354, %353 : vector<1x256xf32>
    %c0_98 = arith.constant 0 : index
    %c0_99 = arith.constant 0 : index
    %c0_100 = arith.constant 0 : index
    %356 = vector.load %arg5[%c0_98, %c0_99, %c0_100] : memref<1x7x256xf32, #tpu.memory_space<vmem>>, vector<1x1x256xf32>
    %357 = vector.shape_cast %356 : vector<1x1x256xf32> to vector<1x256xf32>
    %358 = vector.shape_cast %355 : vector<1x256xf32> to vector<1x1x256xf32>
    tpu.vector_store %arg5[%c0_98, %c0_99, %c0_100], %358 {strides = array<i32>} : memref<1x7x256xf32, #tpu.memory_space<vmem>>, vector<1x1x256xf32>,
    %359 = vector.extract_strided_slice %1 {offsets = [0, 1], sizes = [16, 1], strides = [1, 1]} : vector<16x3xf32> to vector<16x1xf32>
    %cst_101 = arith.constant 0.000000e+00 : f32
    %360 = vector.shape_cast %359 : vector<16x1xf32> to vector<16x1xf32>
    %361 = vector.broadcast %360 : vector<16x1xf32> to vector<16x256xf32>
    %362 = vector.broadcast %cst_101 : f32 to vector<16x256xf32>
    %363 = arith.select %43, %361, %362 : vector<16x256xi1>, vector<16x256xf32>
    %cst_102 = arith.constant dense<0.000000e+00> : vector<256xf32>
    %364 = vector.multi_reduction <add>, %363, %cst_102 [0] : vector<16x256xf32> to vector<256xf32>
    %365 = vector.shape_cast %364 : vector<256xf32> to vector<1x256xf32>
    %366 = vector.extract_strided_slice %346 {offsets = [1, 0], sizes = [1, 256], strides = [1, 1]} : vector<8x256xf32> to vector<1x256xf32>
    %367 = arith.subf %366, %365 : vector<1x256xf32>
    %c0_103 = arith.constant 0 : index
    %c1 = arith.constant 1 : index
    %c0_104 = arith.constant 0 : index
    %368 = vector.load %arg5[%c0_103, %c1, %c0_104] : memref<1x7x256xf32, #tpu.memory_space<vmem>>, vector<1x1x256xf32>
    %369 = vector.shape_cast %368 : vector<1x1x256xf32> to vector<1x256xf32>
    %370 = vector.shape_cast %367 : vector<1x256xf32> to vector<1x1x256xf32>
    tpu.vector_store %arg5[%c0_103, %c1, %c0_104], %370 {strides = array<i32>} : memref<1x7x256xf32, #tpu.memory_space<vmem>>, vector<1x1x256xf32>,
    %371 = vector.extract_strided_slice %1 {offsets = [0, 2], sizes = [16, 1], strides = [1, 1]} : vector<16x3xf32> to vector<16x1xf32>
    %cst_105 = arith.constant 0.000000e+00 : f32
    %372 = vector.shape_cast %371 : vector<16x1xf32> to vector<16x1xf32>
    %373 = vector.broadcast %372 : vector<16x1xf32> to vector<16x256xf32>
    %374 = vector.broadcast %cst_105 : f32 to vector<16x256xf32>
    %375 = arith.select %43, %373, %374 : vector<16x256xi1>, vector<16x256xf32>
    %cst_106 = arith.constant dense<0.000000e+00> : vector<256xf32>
    %376 = vector.multi_reduction <add>, %375, %cst_106 [0] : vector<16x256xf32> to vector<256xf32>
    %377 = vector.shape_cast %376 : vector<256xf32> to vector<1x256xf32>
    %378 = vector.extract_strided_slice %346 {offsets = [2, 0], sizes = [1, 256], strides = [1, 1]} : vector<8x256xf32> to vector<1x256xf32>
    %379 = arith.subf %378, %377 : vector<1x256xf32>
    %c0_107 = arith.constant 0 : index
    %c2 = arith.constant 2 : index
    %c0_108 = arith.constant 0 : index
    %380 = vector.load %arg5[%c0_107, %c2, %c0_108] : memref<1x7x256xf32, #tpu.memory_space<vmem>>, vector<1x1x256xf32>
    %381 = vector.shape_cast %380 : vector<1x1x256xf32> to vector<1x256xf32>
    %382 = vector.shape_cast %379 : vector<1x256xf32> to vector<1x1x256xf32>
    tpu.vector_store %arg5[%c0_107, %c2, %c0_108], %382 {strides = array<i32>} : memref<1x7x256xf32, #tpu.memory_space<vmem>>, vector<1x1x256xf32>,
    %383 = vector.extract_strided_slice %346 {offsets = [3, 0], sizes = [4, 256], strides = [1, 1]} : vector<8x256xf32> to vector<4x256xf32>
    %c0_109 = arith.constant 0 : index
    %c3 = arith.constant 3 : index
    %c0_110 = arith.constant 0 : index
    %384 = vector.load %arg5[%c0_109, %c3, %c0_110] : memref<1x7x256xf32, #tpu.memory_space<vmem>>, vector<1x4x256xf32>
    %385 = vector.shape_cast %384 : vector<1x4x256xf32> to vector<4x256xf32>
    %386 = vector.shape_cast %383 : vector<4x256xf32> to vector<1x4x256xf32>
    tpu.vector_store %arg5[%c0_109, %c3, %c0_110], %386 {strides = array<i32>} : memref<1x7x256xf32, #tpu.memory_space<vmem>>, vector<1x4x256xf32>,
    return
  }
  func.func @transform_0(%arg0: i32, %arg1: i32) -> (i32, i32, i32) {
    %c0_i32 = arith.constant 0 : i32
    %c0_i32_0 = arith.constant 0 : i32
    return %arg0, %arg1, %c0_i32 : i32, i32, i32
  }
  func.func @transform_1(%arg0: i32, %arg1: i32) -> (i32, i32, i32) {
    %c0_i32 = arith.constant 0 : i32
    %c0_i32_0 = arith.constant 0 : i32
    %c0_i32_1 = arith.constant 0 : i32
    return %arg0, %c0_i32, %c0_i32_0 : i32, i32, i32
  }
  func.func @transform_2(%arg0: i32, %arg1: i32) -> (i32, i32, i32) {
    %c0_i32 = arith.constant 0 : i32
    %c0_i32_0 = arith.constant 0 : i32
    %c0_i32_1 = arith.constant 0 : i32
    return %arg0, %c0_i32, %c0_i32_0 : i32, i32, i32
  }
  func.func @transform_3(%arg0: i32, %arg1: i32) -> (i32, i32, i32) {
    %c0_i32 = arith.constant 0 : i32
    %c0_i32_0 = arith.constant 0 : i32
    return %arg0, %c0_i32, %arg1 : i32, i32, i32
  }
}

</mosaic_0001>

<bundles_post_ra>
// kernel: tpu_custom_call.1
= control target key start
LH: loop header
LB: loop body
LE: loop exit
PB: predicated region body
PF: predicated region fallthrough
CT: control target
= control target key end

     0   :  { %s1297_s12 = smov 0   ;;  %s1299_s13 = smov 0   ;;  %s1830_s0 = inlined_call_operand.vmem [shape: f32[2,16,3], index: 0, kind: input, shape index: {}]   ;;  %s1831_s1 = inlined_call_operand.vmem [shape: f32[2,3,64], index: 1, kind: input, shape index: {}]   ;;  %s1832_s2 = inlined_call_operand.vmem [shape: bf16[2,16,64], index: 2, kind: input, shape index: {}]   ;;  %s1833_s3 = inlined_call_operand.vmem [shape: f32[2,7,256], index: 3, kind: output, shape index: {}]  }
   0x1   :  { %s1301_s14 = smov 0  }
   0x2 LB: > { %s25_s15 = sadd.s32 1, %s1266_s13  ;;  %p1165_p0 = scmp.ge.s32.totalorder %s1270_s14, 1  ;;  %s1270_s14 = sphi %s1301_s14, %s13_s14   ;;  %s1266_s13 = sphi %s1299_s13, %s1845_s13   ;;  %s1262_s12 = sphi %s1297_s12, %s1844_s12  }
   0x3   : > { %p27_p1 = scmp.ge.s32.totalorder %s25_s15, 2  ;;  %p177_p2 = scmp.lt.s32.totalorder %s1270_s14, 3 }
   0x5   : > { %s1847_s15 = smov (%p27_p1, %s25_s15), 0  ;;  %p178_p3 = pnand %p1165_p0, %p177_p2 }
   0x6   : > { %p219_p4 = scmp.lt.s32.totalorder (!%p178_p3), %s1262_s12, 1  ;;  %v1272_v0 = vmov (!%p178_p3), 1   ;;  %v1273_v1 = vmov (!%p178_p3), 0   ;;  %v1274_v4 = vmov (!%p178_p3), 2   ;;  %v261_v5 = vlaneseq (!%p178_p3) }
   0x7   : > { %181 = sbr.rel (%p178_p3) target bundleno = 2747 (0xabb), region = 32  ;;  %1244 = vset.pattern.permute.xlu1 (!%p178_p3), %v1272_v0  ;;  %1243 = vset.pattern.permute.xlu0 (!%p178_p3), %v1273_v1  ;;  %vm1838_vm4 = vcmask (!%p178_p3), 523264  }
   0x8   : > { %907 = vmatprep.mubr.bf16.mxu0 (!%p178_p3), %v1273_v1  ;;  %v308_v6 = vand.u32 (!%p178_p3), 127, %v261_v5  ;;  %v1331_v10 = vshrl.u32 (!%p178_p3), %v261_v5, 7 }
   0xa   : > { %v1324_v7 = vadd.s32 (!%p178_p3), 128, %v308_v6  ;;  %v1326_v8 = vcvt.s32.f32 (!%p178_p3), %v308_v6  ;;  %v327_v13 = vadd.s32 (!%p178_p3), 8, %v1331_v10  ;;  %v281_v14 = vsub.s32 (!%p178_p3), 1, %v1331_v10 }
   0xb   : > { %v263_v15 = vsub.s32 (!%p178_p3), 0, %v1331_v10  ;;  %v1347_v19 = vcvt.s32.f32 (!%p178_p3), %v1331_v10  ;;  %v299_v25 = vsub.s32 (!%p178_p3), 2, %v1331_v10 }
   0xc   : > { %v315_v9 = vcvt.s32.f32 (!%p178_p3), %v1324_v7  ;;  %v317_v11 = vmul.f32 (!%p178_p3), 0.0625, %v1326_v8  ;;  %v1349_v20 = vcvt.s32.f32 (!%p178_p3), %v327_v13 }
   0xe   : > { %s1849_s12 = smov (!%p219_p4, %s1262_s12), 1  ;;  %v318_v12 = vmul.f32 0.0625, %v315_v9  ;;  %v1342_v17 = vfloor.f32 %v317_v11 }
   0xf   : > { %s1211_s16 = sshll.u32 %s1849_s12, 4  ;;  %s1168_s20 = sshll.u32 %s1849_s12, 2 }
  0x10   : > { %s226_s19 = scalar_lea.vmem %s1830_s0, %s1211_s16  ;;  %s231_s23 = scalar_lea.vmem %s1831_s1, %s1168_s20  ;;  %v1344_v18 = vfloor.f32 %v318_v12  ;;  %vm1836_vm0 = vcmp.eq.f32.partialorder %v1342_v17, %v1347_v19  ;;  %vm1837_vm2 = vcmp.eq.f32.partialorder %v1342_v17, %v1349_v20 }
  0x11   : > { %v248_v2 = vld [vmem:[%s226_s19] sm:$0xff]  ;;  %v249_v3 = vld [vmem:[%s226_s19 + $0x8] sm:$0xff]  ;;  %s1212_s24 = sshll.u32 %s1849_s12, 3  ;;  %s1812_s30 = scalar_lea.vmem %s1833_s3, %s1211_s16 }
  0x12   : > { %272 = vperm.xlu1 %1244, %v248_v2   ;;  %253 = vperm.xlu0 %1243, %v248_v2   ;;  %v250_v16 = vld [vmem:[%s231_s23] sm:$0x7]  ;;  %vm1834_vm1 = vcmp.eq.f32.partialorder %v1344_v18, %v1347_v19  ;;  %vm1835_vm3 = vcmp.eq.f32.partialorder %v1344_v18, %v1349_v20  ;;  %s1526_s27 = scalar_lea.vmem %s1832_s2, %s1212_s24 }
  0x13   : > { %v282_v21 = vrot.slane %v250_v16, %v281_v14  ;;  %v264_v23 = vrot.slane %v250_v16, %v263_v15  ;;  %v300_v43 = vrot.slane %v250_v16, %v299_v25 }
  0x16   : > { %276 = vperm.xlu1 %1244, %v249_v3   ;;  %258 = vperm.xlu0 %1243, %v249_v3  }
  0x1a   : > { %1246 = vset.pattern.permute.xlu1 %v1274_v4  ;;  %1245 = vset.pattern.permute.xlu0 %v1274_v4 }
  0x1b   : > { %294 = vperm.xlu1 %1246, %v249_v3   ;;  %290 = vperm.xlu0 %1245, %v248_v2  }
  0x91   : > { %v273_v22 = vpop.permute.xlu1 %272  ;;  %v254_v24 = vpop.permute.xlu0 %253 }
  0x92   : > { %v283_v26 = vsub.f32 %v273_v22, %v282_v21  ;;  %v964_v27 = vsel %vm1836_vm0, %v273_v22, 0.0  ;;  %v965_v28 = vsel %vm1834_vm1, %v273_v22, 0.0  ;;  %v265_v29 = vsub.f32 %v254_v24, %v264_v23 }
  0x93   : > { %v920_v32 = vsel %vm1836_vm0, %v254_v24, 0.0  ;;  %v921_v40 = vsel %vm1834_vm1, %v254_v24, 0.0 }
  0x94   : > { %v285_v49 = vmul.f32 %v283_v26, %v283_v26  ;;  %v267_v50 = vmul.f32 %v265_v29, %v265_v29 }
  0x95   : > { %v277_v30 = vpop.permute.xlu1 %276  ;;  %v259_v31 = vpop.permute.xlu0 %258 }
  0x96   : > { %v284_v33 = vsub.f32 %v277_v30, %v282_v21  ;;  %v966_v34 = vsel %vm1837_vm2, %v277_v30, 0.0  ;;  %v967_v35 = vsel %vm1835_vm3, %v277_v30, 0.0  ;;  %v266_v38 = vsub.f32 %v259_v31, %v264_v23 }
  0x97   : > { %v1375_v36 = vadd.f32 %v966_v34, %v964_v27  ;;  %v1377_v37 = vadd.f32 %v967_v35, %v965_v28  ;;  %v922_v39 = vsel %vm1837_vm2, %v259_v31, 0.0  ;;  %v923_v41 = vsel %vm1835_vm3, %v259_v31, 0.0 }
  0x98   : > { %v1388_v42 = vadd.f32 %v922_v39, %v920_v32  ;;  %v1390_v44 = vadd.f32 %v923_v41, %v921_v40  ;;  %v286_v45 = vmul.f32 %v284_v33, %v284_v33  ;;  %v268_v46 = vmul.f32 %v266_v38, %v266_v38 }
  0x99   : > { %v287_v55 = vadd.f32 %v285_v49, %v267_v50 }
  0x9a   : > { %v1392_v47 = vpop.permute.xlu1 %294  ;;  %v1394_v48 = vpop.permute.xlu0 %290  ;;  %v288_v53 = vadd.f32 %v286_v45, %v268_v46 }
  0x9b   : > { %v302_v51 = vsub.f32 %v1392_v47, %v300_v43  ;;  %v301_v52 = vsub.f32 %v1394_v48, %v300_v43 }
  0x9d   : > { %v304_v54 = vmul.f32 %v302_v51, %v302_v51  ;;  %v303_v56 = vmul.f32 %v301_v52, %v301_v52 }
  0x9f   : > { %v306_v57 = vadd.f32 %v304_v54, %v288_v53  ;;  %v305_v58 = vadd.f32 %v303_v56, %v287_v55 }
  0xa1   : > { %vm311_vm5 = vcmp.lt.f32.partialorder %v306_v57, 0.1225  ;;  %vm310_vm6 = vcmp.lt.f32.partialorder %v305_v58, 0.1225 }
  0xa2   : > { %v313_v59 = vsel %vm311_vm5, %v1326_v8, 64.0  ;;  %v312_v61 = vsel %vm310_vm6, %v1326_v8, 64.0 }
  0xa3   : > { %v338_v60 = vsel %vm1838_vm4, %v313_v59, inf  ;;  %v335_v62 = vsel %vm1838_vm4, %v312_v61, inf }
  0xa4   : > { %339 = vmin.xlane.f32.xlu0 %v338_v60  ;;  %336 = vmin.xlane.f32.xlu1 %v335_v62 }
 0x131   : > { %v1402_v63 = vpop.xlane.xlu0 %339  ;;  %v1404_v0 = vpop.xlane.xlu1 %336 }
 0x132   : > { %vm360_vm7 = vcmp.eq.f32.partialorder %v313_v59, %v1402_v63  ;;  %vm359_vm8 = vcmp.eq.f32.partialorder %v312_v61, %v1404_v0 }
 0x133   : > { %v362_v1 = vsel %vm360_vm7, 64.0, %v313_v59  ;;  %v361_v2 = vsel %vm359_vm8, 64.0, %v312_v61 }
 0x134   : > { %v366_v3 = vsel %vm1838_vm4, %v362_v1, inf  ;;  %v363_v4 = vsel %vm1838_vm4, %v361_v2, inf }
 0x135   : > { %367 = vmin.xlane.f32.xlu1 %v366_v3  ;;  %364 = vmin.xlane.f32.xlu0 %v363_v4 }
 0x1c2   : > { %v1410_v6 = vpop.xlane.xlu1 %367  ;;  %v1413_v11 = vpop.xlane.xlu0 %364 }
 0x1c3   : > { %vm388_vm9 = vcmp.eq.f32.partialorder %v362_v1, %v1410_v6  ;;  %vm387_vm10 = vcmp.eq.f32.partialorder %v361_v2, %v1413_v11 }
 0x1c4   : > { %v390_v12 = vsel %vm388_vm9, 64.0, %v362_v1  ;;  %v389_v14 = vsel %vm387_vm10, 64.0, %v361_v2 }
 0x1c5   : > { %v394_v13 = vsel %vm1838_vm4, %v390_v12, inf  ;;  %v391_v15 = vsel %vm1838_vm4, %v389_v14, inf }
 0x1c6   : > { %395 = vmin.xlane.f32.xlu1 %v394_v13  ;;  %392 = vmin.xlane.f32.xlu0 %v391_v15 }
 0x253   : > { %v1418_v16 = vpop.xlane.xlu1 %395  ;;  %v1421_v22 = vpop.xlane.xlu0 %392 }
 0x254   : > { %vm416_vm11 = vcmp.eq.f32.partialorder %v390_v12, %v1418_v16  ;;  %vm415_vm12 = vcmp.eq.f32.partialorder %v389_v14, %v1421_v22 }
 0x255   : > { %v418_v21 = vsel %vm416_vm11, 64.0, %v390_v12  ;;  %v417_v24 = vsel %vm415_vm12, 64.0, %v389_v14 }
 0x256   : > { %v422_v23 = vsel %vm1838_vm4, %v418_v21, inf  ;;  %v419_v25 = vsel %vm1838_vm4, %v417_v24, inf }
 0x257   : > { %423 = vmin.xlane.f32.xlu1 %v422_v23  ;;  %420 = vmin.xlane.f32.xlu0 %v419_v25 }
 0x2e4   : > { %v1426_v26 = vpop.xlane.xlu1 %423  ;;  %v1429_v28 = vpop.xlane.xlu0 %420 }
 0x2e5   : > { %vm444_vm13 = vcmp.eq.f32.partialorder %v418_v21, %v1426_v26  ;;  %vm443_vm14 = vcmp.eq.f32.partialorder %v417_v24, %v1429_v28 }
 0x2e6   : > { %v446_v27 = vsel %vm444_vm13, 64.0, %v418_v21  ;;  %v445_v30 = vsel %vm443_vm14, 64.0, %v417_v24 }
 0x2e7   : > { %v450_v29 = vsel %vm1838_vm4, %v446_v27, inf  ;;  %v447_v31 = vsel %vm1838_vm4, %v445_v30, inf }
 0x2e8   : > { %451 = vmin.xlane.f32.xlu1 %v450_v29  ;;  %448 = vmin.xlane.f32.xlu0 %v447_v31 }
 0x375   : > { %v1434_v32 = vpop.xlane.xlu1 %451  ;;  %v1437_v34 = vpop.xlane.xlu0 %448 }
 0x376   : > { %vm472_vm15 = vcmp.eq.f32.partialorder %v446_v27, %v1434_v32  ;;  %vm471_vm5 = vcmp.eq.f32.partialorder %v445_v30, %v1437_v34 }
 0x377   : > { %v474_v33 = vsel %vm472_vm15, 64.0, %v446_v27  ;;  %v473_v38 = vsel %vm471_vm5, 64.0, %v445_v30 }
 0x378   : > { %v478_v35 = vsel %vm1838_vm4, %v474_v33, inf  ;;  %v475_v39 = vsel %vm1838_vm4, %v473_v38, inf }
 0x379   : > { %479 = vmin.xlane.f32.xlu1 %v478_v35  ;;  %476 = vmin.xlane.f32.xlu0 %v475_v39 }
 0x406   : > { %v1442_v40 = vpop.xlane.xlu1 %479  ;;  %v1445_v43 = vpop.xlane.xlu0 %476 }
 0x407   : > { %vm500_vm6 = vcmp.eq.f32.partialorder %v474_v33, %v1442_v40  ;;  %vm499_vm7 = vcmp.eq.f32.partialorder %v473_v38, %v1445_v43 }
 0x408   : > { %v502_v41 = vsel %vm500_vm6, 64.0, %v474_v33  ;;  %v501_v46 = vsel %vm499_vm7, 64.0, %v473_v38 }
 0x409   : > { %v506_v45 = vsel %vm1838_vm4, %v502_v41, inf  ;;  %v503_v49 = vsel %vm1838_vm4, %v501_v46, inf }
 0x40a   : > { %507 = vmin.xlane.f32.xlu1 %v506_v45  ;;  %504 = vmin.xlane.f32.xlu0 %v503_v49 }
 0x497   : > { %v1450_v50 = vpop.xlane.xlu1 %507  ;;  %v1453_v52 = vpop.xlane.xlu0 %504 }
 0x498   : > { %vm528_vm8 = vcmp.eq.f32.partialorder %v502_v41, %v1450_v50  ;;  %vm527_vm9 = vcmp.eq.f32.partialorder %v501_v46, %v1453_v52 }
 0x499   : > { %v530_v51 = vsel %vm528_vm8, 64.0, %v502_v41  ;;  %v529_v54 = vsel %vm527_vm9, 64.0, %v501_v46 }
 0x49a   : > { %v534_v53 = vsel %vm1838_vm4, %v530_v51, inf  ;;  %v531_v55 = vsel %vm1838_vm4, %v529_v54, inf }
 0x49b   : > { %535 = vmin.xlane.f32.xlu1 %v534_v53  ;;  %532 = vmin.xlane.f32.xlu0 %v531_v55 }
 0x528   : > { %v1458_v56 = vpop.xlane.xlu1 %535  ;;  %v1461_v58 = vpop.xlane.xlu0 %532 }
 0x529   : > { %vm556_vm10 = vcmp.eq.f32.partialorder %v530_v51, %v1458_v56  ;;  %vm555_vm11 = vcmp.eq.f32.partialorder %v529_v54, %v1461_v58 }
 0x52a   : > { %v558_v57 = vsel %vm556_vm10, 64.0, %v530_v51  ;;  %v557_v60 = vsel %vm555_vm11, 64.0, %v529_v54 }
 0x52b   : > { %v562_v59 = vsel %vm1838_vm4, %v558_v57, inf  ;;  %v559_v61 = vsel %vm1838_vm4, %v557_v60, inf }
 0x52c   : > { %563 = vmin.xlane.f32.xlu1 %v562_v59  ;;  %560 = vmin.xlane.f32.xlu0 %v559_v61 }
 0x5b9   : > { %v1466_v62 = vpop.xlane.xlu1 %563  ;;  %v1469_v2 = vpop.xlane.xlu0 %560 }
 0x5ba   : > { %vm584_vm12 = vcmp.eq.f32.partialorder %v558_v57, %v1466_v62  ;;  %vm583_vm13 = vcmp.eq.f32.partialorder %v557_v60, %v1469_v2 }
 0x5bb   : > { %v586_v1 = vsel %vm584_vm12, 64.0, %v558_v57  ;;  %v585_v4 = vsel %vm583_vm13, 64.0, %v557_v60 }
 0x5bc   : > { %v590_v3 = vsel %vm1838_vm4, %v586_v1, inf  ;;  %v587_v12 = vsel %vm1838_vm4, %v585_v4, inf }
 0x5bd   : > { %591 = vmin.xlane.f32.xlu1 %v590_v3  ;;  %588 = vmin.xlane.f32.xlu0 %v587_v12 }
 0x64a   : > { %v1474_v13 = vpop.xlane.xlu1 %591  ;;  %v1477_v15 = vpop.xlane.xlu0 %588 }
 0x64b   : > { %vm612_vm14 = vcmp.eq.f32.partialorder %v586_v1, %v1474_v13  ;;  %vm611_vm15 = vcmp.eq.f32.partialorder %v585_v4, %v1477_v15 }
 0x64c   : > { %v614_v14 = vsel %vm612_vm14, 64.0, %v586_v1  ;;  %v613_v23 = vsel %vm611_vm15, 64.0, %v585_v4  ;;  %vm342_vm15 = vcmp.lt.f32.partialorder %v1402_v63, 64.0 }
 0x64d   : > { %v618_v21 = vsel %vm1838_vm4, %v614_v14, inf  ;;  %v615_v24 = vsel %vm1838_vm4, %v613_v23, inf }
 0x64e   : > { %619 = vmin.xlane.f32.xlu1 %v618_v21  ;;  %616 = vmin.xlane.f32.xlu0 %v615_v24 }
 0x6db   : > { %v1482_v25 = vpop.xlane.xlu1 %619  ;;  %v1485_v29 = vpop.xlane.xlu0 %616 }
 0x6dc   : > { %vm640_vm5 = vcmp.eq.f32.partialorder %v614_v14, %v1482_v25  ;;  %vm639_vm6 = vcmp.eq.f32.partialorder %v613_v23, %v1485_v29 }
 0x6dd   : > { %v642_v27 = vsel %vm640_vm5, 64.0, %v614_v14  ;;  %v641_v31 = vsel %vm639_vm6, 64.0, %v613_v23  ;;  %vm370_vm5 = vcmp.lt.f32.partialorder %v1410_v6, 64.0  ;;  %vm341_vm6 = vcmp.lt.f32.partialorder %v1404_v0, 64.0 }
 0x6de   : > { %v646_v30 = vsel %vm1838_vm4, %v642_v27, inf  ;;  %v643_v33 = vsel %vm1838_vm4, %v641_v31, inf  ;;  %v1550_v7 = vsel %vm341_vm6, %v1404_v0, 0.0  ;;  %vm425_vm6 = vcmp.lt.f32.partialorder %v1429_v28, 64.0 }
 0x6df   : > { %647 = vmin.xlane.f32.xlu1 %v646_v30  ;;  %644 = vmin.xlane.f32.xlu0 %v643_v33  ;;  %v321_v30 = vmul.f32 16.0, %v1342_v17 }
 0x6e1   : > { %v1531_v33 = vsub.f32 %v1326_v8, %v321_v30 }
 0x76c   : > { %v1490_v35 = vpop.xlane.xlu1 %647  ;;  %v1493_v39 = vpop.xlane.xlu0 %644 }
 0x76d   : > { %vm668_vm7 = vcmp.eq.f32.partialorder %v642_v27, %v1490_v35  ;;  %vm667_vm8 = vcmp.eq.f32.partialorder %v641_v31, %v1493_v39 }
 0x76e   : > { %v670_v38 = vsel %vm668_vm7, 64.0, %v642_v27  ;;  %v669_v45 = vsel %vm667_vm8, 64.0, %v641_v31  ;;  %v322_v31 = vmul.f32 16.0, %v1344_v18  ;;  %vm369_vm7 = vcmp.lt.f32.partialorder %v1413_v11, 64.0 }
 0x76f   : > { %v674_v41 = vsel %vm1838_vm4, %v670_v38, inf  ;;  %v671_v46 = vsel %vm1838_vm4, %v669_v45, inf  ;;  %vm345_vm8 = vcmp.eq.f32.partialorder %v1531_v33, 0.0 }
 0x770   : > { %675 = vmin.xlane.f32.xlu1 %v674_v41  ;;  %672 = vmin.xlane.f32.xlu0 %v671_v46  ;;  %v1541_v41 = vsel %vm342_vm15, %v1402_v63, 0.0  ;;  %vm426_vm15 = vcmp.lt.f32.partialorder %v1426_v26, 64.0 }
 0x771   : > { %v372_v8 = vsel %vm370_vm5, %v1410_v6, %v1541_v41  ;;  %v353_v63 = vsel %vm345_vm8, %v1541_v41, 0.0 }
 0x7fd   : > { %v1498_v49 = vpop.xlane.xlu1 %675  ;;  %v1501_v53 = vpop.xlane.xlu0 %672 }
 0x7fe   : > { %vm696_vm9 = vcmp.eq.f32.partialorder %v670_v38, %v1498_v49  ;;  %vm695_vm10 = vcmp.eq.f32.partialorder %v669_v45, %v1501_v53 }
 0x7ff   : > { %v698_v51 = vsel %vm696_vm9, 64.0, %v670_v38  ;;  %v697_v55 = vsel %vm695_vm10, 64.0, %v669_v45  ;;  %v1536_v38 = vsub.f32 %v315_v9, %v322_v31  ;;  %vm373_vm9 = vcmp.eq.f32.partialorder %v1531_v33, 1.0 }
 0x800   : > { %v702_v54 = vsel %vm1838_vm4, %v698_v51, inf  ;;  %v699_v57 = vsel %vm1838_vm4, %v697_v55, inf  ;;  %vm398_vm10 = vcmp.lt.f32.partialorder %v1418_v16, 64.0  ;;  %v371_v9 = vsel %vm369_vm7, %v1413_v11, %v1550_v7 }
 0x801   : > { %703 = vmin.xlane.f32.xlu1 %v702_v54  ;;  %700 = vmin.xlane.f32.xlu0 %v699_v57  ;;  %v381_v45 = vsel %vm373_vm9, %v372_v8, 0.0  ;;  %v400_v0 = vsel %vm398_vm10, %v1418_v16, %v1541_v41  ;;  %v379_v54 = vsel %vm373_vm9, %v371_v9, 0.0  ;;  %vm402_vm5 = vcmp.eq.f32.partialorder %v1536_v38, 2.0 }
 0x802   : > { %v385_v16 = vadd.f32 %v381_v45, %v353_v63  ;;  %vm429_vm7 = vcmp.eq.f32.partialorder %v1531_v33, 3.0  ;;  %vm430_vm9 = vcmp.eq.f32.partialorder %v1536_v38, 3.0  ;;  %vm453_vm10 = vcmp.lt.f32.partialorder %v1437_v34, 64.0 }
 0x88e   : > { %v1506_v59 = vpop.xlane.xlu1 %703  ;;  %v1509_v61 = vpop.xlane.xlu0 %700 }
 0x88f   : > { %vm724_vm11 = vcmp.eq.f32.partialorder %v698_v51, %v1506_v59  ;;  %vm723_vm12 = vcmp.eq.f32.partialorder %v697_v55, %v1509_v61 }
 0x890   : > { %v726_v60 = vsel %vm724_vm11, 64.0, %v698_v51  ;;  %v725_v3 = vsel %vm723_vm12, 64.0, %v697_v55  ;;  %vm346_vm11 = vcmp.eq.f32.partialorder %v1536_v38, 0.0  ;;  %vm374_vm12 = vcmp.eq.f32.partialorder %v1536_v38, 1.0 }
 0x891   : > { %v730_v1 = vsel %vm1838_vm4, %v726_v60, inf  ;;  %v727_v4 = vsel %vm1838_vm4, %v725_v3, inf  ;;  %v354_v6 = vsel %vm346_vm11, %v1541_v41, 0.0  ;;  %v382_v46 = vsel %vm374_vm12, %v372_v8, 0.0 }
 0x892   : > { %731 = vmin.xlane.f32.xlu1 %v730_v1  ;;  %728 = vmin.xlane.f32.xlu0 %v727_v4  ;;  %v351_v51 = vsel %vm345_vm8, %v1550_v7, 0.0  ;;  %v352_v11 = vsel %vm346_vm11, %v1550_v7, 0.0  ;;  %v380_v57 = vsel %vm374_vm12, %v371_v9, 0.0  ;;  %v386_v1 = vadd.f32 %v382_v46, %v354_v6 }
 0x893   : > { %vm454_vm8 = vcmp.lt.f32.partialorder %v1434_v32, 64.0  ;;  %v383_v4 = vadd.f32 %v379_v54, %v351_v51  ;;  %vm457_vm11 = vcmp.eq.f32.partialorder %v1531_v33, 4.0  ;;  %vm482_vm12 = vcmp.lt.f32.partialorder %v1442_v40, 64.0 }
 0x894   : > { %v456_v31 = vsel %vm454_vm8, %v1434_v32, %v1541_v41  ;;  %vm509_vm8 = vcmp.lt.f32.partialorder %v1453_v52, 64.0 }
 0x895   : > { %v465_v51 = vsel %vm457_vm11, %v456_v31, 0.0 }
 0x91f   : > { %v1514_v12 = vpop.xlane.xlu1 %731  ;;  %v1517_v21 = vpop.xlane.xlu0 %728 }
 0x920   : > { %vm752_vm13 = vcmp.eq.f32.partialorder %v726_v60, %v1514_v12  ;;  %vm751_vm14 = vcmp.eq.f32.partialorder %v725_v3, %v1517_v21 }
 0x921   : > { %v754_v14 = vsel %vm752_vm13, 64.0, %v726_v60  ;;  %v753_v24 = vsel %vm751_vm14, 64.0, %v725_v3  ;;  %vm397_vm13 = vcmp.lt.f32.partialorder %v1421_v22, 64.0  ;;  %vm401_vm14 = vcmp.eq.f32.partialorder %v1531_v33, 2.0 }
 0x922   : > { %v758_v23 = vsel %vm1838_vm4, %v754_v14, inf  ;;  %v755_v27 = vsel %vm1838_vm4, %v753_v24, inf  ;;  %v399_v55 = vsel %vm397_vm13, %v1421_v22, %v1550_v7  ;;  %v409_v60 = vsel %vm401_vm14, %v400_v0, 0.0 }
 0x923   : > { %759 = vmin.xlane.f32.xlu1 %v758_v23  ;;  %756 = vmin.xlane.f32.xlu0 %v755_v27  ;;  %v428_v3 = vsel %vm426_vm15, %v1426_v26, %v1541_v41  ;;  %v410_v22 = vsel %vm402_vm5, %v400_v0, 0.0  ;;  %v407_v14 = vsel %vm401_vm14, %v399_v55, 0.0  ;;  %v384_v23 = vadd.f32 %v380_v57, %v352_v11 }
 0x924   : > { %v413_v24 = vadd.f32 %v409_v60, %v385_v16  ;;  %v427_v27 = vsel %vm425_vm6, %v1429_v28, %v1550_v7  ;;  %v408_v26 = vsel %vm402_vm5, %v399_v55, 0.0  ;;  %v437_v30 = vsel %vm429_vm7, %v428_v3, 0.0 }
 0x925   : > { %v414_v8 = vadd.f32 %v410_v22, %v386_v1  ;;  %v411_v9 = vadd.f32 %v407_v14, %v383_v4  ;;  %v438_v63 = vsel %vm430_vm9, %v428_v3, 0.0  ;;  %v435_v28 = vsel %vm429_vm7, %v427_v27, 0.0 }
 0x926   : > { %v436_v45 = vsel %vm430_vm9, %v427_v27, 0.0  ;;  %vm458_vm13 = vcmp.eq.f32.partialorder %v1536_v38, 4.0  ;;  %v455_v0 = vsel %vm453_vm10, %v1437_v34, %v1550_v7  ;;  %v412_v6 = vadd.f32 %v408_v26, %v384_v23 }
 0x927   : > { %v441_v46 = vadd.f32 %v437_v30, %v413_v24  ;;  %vm481_vm14 = vcmp.lt.f32.partialorder %v1445_v43, 64.0  ;;  %v442_v32 = vadd.f32 %v438_v63, %v414_v8  ;;  %vm485_vm15 = vcmp.eq.f32.partialorder %v1531_v33, 5.0 }
 0x928   : > { %v484_v11 = vsel %vm482_vm12, %v1442_v40, %v1541_v41  ;;  %vm510_vm5 = vcmp.lt.f32.partialorder %v1450_v50, 64.0  ;;  %v439_v54 = vadd.f32 %v435_v28, %v411_v9  ;;  %v440_v55 = vadd.f32 %v436_v45, %v412_v6 }
 0x929   : > { %v466_v16 = vsel %vm458_vm13, %v456_v31, 0.0  ;;  %v463_v34 = vsel %vm457_vm11, %v455_v0, 0.0  ;;  %v469_v57 = vadd.f32 %v465_v51, %v441_v46  ;;  %v464_v60 = vsel %vm458_vm13, %v455_v0, 0.0 }
 0x92a   : > { %vm486_vm6 = vcmp.eq.f32.partialorder %v1536_v38, 5.0  ;;  %v483_v1 = vsel %vm481_vm14, %v1445_v43, %v1550_v7  ;;  %v493_v3 = vsel %vm485_vm15, %v484_v11, 0.0  ;;  %vm513_vm7 = vcmp.eq.f32.partialorder %v1531_v33, 6.0 }
 0x92b   : > { %v512_v40 = vsel %vm510_vm5, %v1450_v50, %v1541_v41  ;;  %v470_v4 = vadd.f32 %v466_v16, %v442_v32  ;;  %v467_v22 = vadd.f32 %v463_v34, %v439_v54  ;;  %vm514_vm9 = vcmp.eq.f32.partialorder %v1536_v38, 6.0 }
 0x92c   : > { %vm538_vm10 = vcmp.lt.f32.partialorder %v1458_v56, 64.0  ;;  %v468_v14 = vadd.f32 %v464_v60, %v440_v55  ;;  %v494_v23 = vsel %vm486_vm6, %v484_v11, 0.0  ;;  %v491_v43 = vsel %vm485_vm15, %v483_v1, 0.0 }
 0x92d   : > { %vm537_vm11 = vcmp.lt.f32.partialorder %v1461_v58, 64.0  ;;  %v497_v24 = vadd.f32 %v493_v3, %v469_v57  ;;  %v492_v27 = vsel %vm486_vm6, %v483_v1, 0.0  ;;  %v521_v50 = vsel %vm513_vm7, %v512_v40, 0.0 }
 0x92e   : > { %v511_v26 = vsel %vm509_vm8, %v1453_v52, %v1550_v7  ;;  %v522_v30 = vsel %vm514_vm9, %v512_v40, 0.0  ;;  %vm541_vm12 = vcmp.eq.f32.partialorder %v1531_v33, 7.0  ;;  %vm542_vm13 = vcmp.eq.f32.partialorder %v1536_v38, 7.0 }
 0x92f   : > { %v540_v31 = vsel %vm538_vm10, %v1458_v56, %v1541_v41  ;;  %v498_v8 = vadd.f32 %v494_v23, %v470_v4  ;;  %v495_v9 = vadd.f32 %v491_v43, %v467_v22  ;;  %v539_v63 = vsel %vm537_vm11, %v1461_v58, %v1550_v7 }
 0x930   : > { %vm566_vm14 = vcmp.lt.f32.partialorder %v1466_v62, 64.0  ;;  %v496_v28 = vadd.f32 %v492_v27, %v468_v14  ;;  %v525_v45 = vadd.f32 %v521_v50, %v497_v24  ;;  %v519_v52 = vsel %vm513_vm7, %v511_v26, 0.0 }
 0x931   : > { %v520_v0 = vsel %vm514_vm9, %v511_v26, 0.0  ;;  %v526_v6 = vadd.f32 %v522_v30, %v498_v8  ;;  %v549_v46 = vsel %vm541_vm12, %v540_v31, 0.0  ;;  %v550_v51 = vsel %vm542_vm13, %v540_v31, 0.0 }
 0x932   : > { %vm565_vm15 = vcmp.lt.f32.partialorder %v1469_v2, 64.0  ;;  %v547_v56 = vsel %vm541_vm12, %v539_v63, 0.0  ;;  %v548_v32 = vsel %vm542_vm13, %v539_v63, 0.0  ;;  %vm569_vm5 = vcmp.eq.f32.partialorder %v1531_v33, 8.0 }
 0x933   : > { %v568_v58 = vsel %vm566_vm14, %v1466_v62, %v1541_v41  ;;  %v523_v11 = vadd.f32 %v519_v52, %v495_v9  ;;  %v524_v54 = vadd.f32 %v520_v0, %v496_v28  ;;  %vm570_vm6 = vcmp.eq.f32.partialorder %v1536_v38, 8.0 }
 0x934   : > { %vm594_vm7 = vcmp.lt.f32.partialorder %v1474_v13, 64.0  ;;  %v553_v55 = vadd.f32 %v549_v46, %v525_v45  ;;  %v554_v16 = vadd.f32 %v550_v51, %v526_v6  ;;  %v567_v34 = vsel %vm565_vm15, %v1469_v2, %v1550_v7 }
 0x935   : > { %vm593_vm8 = vcmp.lt.f32.partialorder %v1477_v15, 64.0  ;;  %v551_v57 = vadd.f32 %v547_v56, %v523_v11  ;;  %v552_v60 = vadd.f32 %v548_v32, %v524_v54  ;;  %v577_v1 = vsel %vm569_vm5, %v568_v58, 0.0 }
 0x936   : > { %vm622_vm9 = vcmp.lt.f32.partialorder %v1482_v25, 64.0  ;;  %v578_v62 = vsel %vm570_vm6, %v568_v58, 0.0  ;;  %vm597_vm10 = vcmp.eq.f32.partialorder %v1531_v33, 9.0  ;;  %v596_v3 = vsel %vm594_vm7, %v1474_v13, %v1541_v41 }
 0x937   : > { %vm621_vm11 = vcmp.lt.f32.partialorder %v1485_v29, 64.0  ;;  %v575_v2 = vsel %vm569_vm5, %v567_v34, 0.0  ;;  %v576_v40 = vsel %vm570_vm6, %v567_v34, 0.0  ;;  %vm598_vm12 = vcmp.eq.f32.partialorder %v1536_v38, 9.0 }
 0x938   : > { %v595_v4 = vsel %vm593_vm8, %v1477_v15, %v1550_v7  ;;  %v581_v22 = vadd.f32 %v577_v1, %v553_v55  ;;  %vm625_vm13 = vcmp.eq.f32.partialorder %v1531_v33, 10.0  ;;  %v624_v14 = vsel %vm622_vm9, %v1482_v25, %v1541_v41 }
 0x939   : > { %vm650_vm14 = vcmp.lt.f32.partialorder %v1490_v35, 64.0  ;;  %v582_v13 = vadd.f32 %v578_v62, %v554_v16  ;;  %v605_v23 = vsel %vm597_vm10, %v596_v3, 0.0  ;;  %vm626_vm15 = vcmp.eq.f32.partialorder %v1536_v38, 10.0 }
 0x93a   : > { %v623_v43 = vsel %vm621_vm11, %v1485_v29, %v1550_v7  ;;  %v579_v24 = vadd.f32 %v575_v2, %v551_v57  ;;  %v580_v27 = vadd.f32 %v576_v40, %v552_v60  ;;  %v606_v15 = vsel %vm598_vm12, %v596_v3, 0.0 }
 0x93b   : > { %v603_v50 = vsel %vm597_vm10, %v595_v4, 0.0  ;;  %v604_v26 = vsel %vm598_vm12, %v595_v4, 0.0  ;;  %v633_v25 = vsel %vm625_vm13, %v624_v14, 0.0  ;;  %vm653_vm5 = vcmp.eq.f32.partialorder %v1531_v33, 11.0 }
 0x93c   : > { %v652_v30 = vsel %vm650_vm14, %v1490_v35, %v1541_v41  ;;  %v609_v31 = vadd.f32 %v605_v23, %v581_v22  ;;  %v634_v8 = vsel %vm626_vm15, %v624_v14, 0.0  ;;  %v631_v29 = vsel %vm625_vm13, %v623_v43, 0.0 }
 0x93d   : > { %vm654_vm6 = vcmp.eq.f32.partialorder %v1536_v38, 11.0  ;;  %v610_v9 = vadd.f32 %v606_v15, %v582_v13  ;;  %v607_v63 = vadd.f32 %v603_v50, %v579_v24  ;;  %vm649_vm7 = vcmp.lt.f32.partialorder %v1493_v39, 64.0 }
 0x93e   : > { %vm678_vm8 = vcmp.lt.f32.partialorder %v1498_v49, 64.0  ;;  %v608_v28 = vadd.f32 %v604_v26, %v580_v27  ;;  %v637_v45 = vadd.f32 %v633_v25, %v609_v31  ;;  %v632_v35 = vsel %vm626_vm15, %v623_v43, 0.0 }
 0x93f   : > { %v661_v52 = vsel %vm653_vm5, %v652_v30, 0.0  ;;  %v638_v0 = vadd.f32 %v634_v8, %v610_v9  ;;  %v635_v6 = vadd.f32 %v631_v29, %v607_v63  ;;  %v662_v46 = vsel %vm654_vm6, %v652_v30, 0.0 }
 0x940   : > { %vm706_vm9 = vcmp.lt.f32.partialorder %v1506_v59, 64.0  ;;  %v651_v51 = vsel %vm649_vm7, %v1493_v39, %v1550_v7  ;;  %vm681_vm10 = vcmp.eq.f32.partialorder %v1531_v33, 12.0  ;;  %vm682_vm11 = vcmp.eq.f32.partialorder %v1536_v38, 12.0 }
 0x941   : > { %v680_v56 = vsel %vm678_vm8, %v1498_v49, %v1541_v41  ;;  %v636_v32 = vadd.f32 %v632_v35, %v608_v28  ;;  %v665_v58 = vadd.f32 %v661_v52, %v637_v45  ;;  %vm677_vm12 = vcmp.lt.f32.partialorder %v1501_v53, 64.0 }
 0x942   : > { %vm734_vm13 = vcmp.lt.f32.partialorder %v1514_v12, 64.0  ;;  %v666_v11 = vadd.f32 %v662_v46, %v638_v0  ;;  %vm709_vm14 = vcmp.eq.f32.partialorder %v1531_v33, 13.0  ;;  %vm710_vm15 = vcmp.eq.f32.partialorder %v1536_v38, 13.0 }
 0x943   : > { %v708_v39 = vsel %vm706_vm9, %v1506_v59, %v1541_v41  ;;  %v659_v54 = vsel %vm653_vm5, %v651_v51, 0.0  ;;  %v689_v49 = vsel %vm681_vm10, %v680_v56, 0.0  ;;  %v690_v55 = vsel %vm682_vm11, %v680_v56, 0.0 }
 0x944   : > { %vm705_vm7 = vcmp.lt.f32.partialorder %v1509_v61, 64.0  ;;  %v660_v16 = vsel %vm654_vm6, %v651_v51, 0.0  ;;  %v679_v34 = vsel %vm677_vm12, %v1501_v53, %v1550_v7  ;;  %vm737_vm8 = vcmp.eq.f32.partialorder %v1531_v33, 14.0 }
 0x945   : > { %v736_v59 = vsel %vm734_vm13, %v1514_v12, %v1541_v41  ;;  %v717_v57 = vsel %vm709_vm14, %v708_v39, 0.0  ;;  %v718_v60 = vsel %vm710_vm15, %v708_v39, 0.0  ;;  %vm738_vm5 = vcmp.eq.f32.partialorder %v1536_v38, 14.0 }
 0x946   : > { %vm733_vm9 = vcmp.lt.f32.partialorder %v1517_v21, 64.0  ;;  %v663_v1 = vadd.f32 %v659_v54, %v635_v6  ;;  %v693_v62 = vadd.f32 %v689_v49, %v665_v58  ;;  %v694_v3 = vadd.f32 %v690_v55, %v666_v11 }
 0x947   : > { %v707_v53 = vsel %vm705_vm7, %v1509_v61, %v1550_v7  ;;  %v664_v2 = vadd.f32 %v660_v16, %v636_v32  ;;  %v687_v12 = vsel %vm681_vm10, %v679_v34, 0.0  ;;  %v688_v40 = vsel %vm682_vm11, %v679_v34, 0.0 }
 0x948   : > { %v745_v4 = vsel %vm737_vm8, %v736_v59, 0.0  ;;  %v721_v22 = vadd.f32 %v717_v57, %v693_v62  ;;  %v722_v14 = vadd.f32 %v718_v60, %v694_v3  ;;  %v746_v13 = vsel %vm738_vm5, %v736_v59, 0.0 }
 0x949   : > { %v735_v23 = vsel %vm733_vm9, %v1517_v21, %v1550_v7  ;;  %v715_v61 = vsel %vm709_vm14, %v707_v53, 0.0  ;;  %v716_v43 = vsel %vm710_vm15, %v707_v53, 0.0  ;;  %vm765_vm6 = vcmp.eq.f32.partialorder %v1531_v33, 15.0 }
 0x94a   : > { %vm766_vm10 = vcmp.eq.f32.partialorder %v1536_v38, 15.0  ;;  %v691_v27 = vadd.f32 %v687_v12, %v663_v1  ;;  %v692_v15 = vadd.f32 %v688_v40, %v664_v2  ;;  %v749_v50 = vadd.f32 %v745_v4, %v721_v22 }
 0x94b   : > { %v750_v26 = vadd.f32 %v746_v13, %v722_v14  ;;  %v743_v25 = vsel %vm737_vm8, %v735_v23, 0.0  ;;  %v744_v21 = vsel %vm738_vm5, %v735_v23, 0.0  ;;  %v797_v34 = vadd.s32 16, %v1331_v10 }
 0x94c   : > { %v719_v31 = vadd.f32 %v715_v61, %v691_v27  ;;  %v720_v8 = vadd.f32 %v716_v43, %v692_v15  ;;  %v798_v59 = vadd.s32 24, %v1331_v10  ;;  %v799_v1 = vadd.s32 32, %v1331_v10  ;;  %v1247_v27 = vld [vmem:[%s1526_s27] sm:$0xff]  }
 0x94d   : > { %v800_v62 = vadd.s32 40, %v1331_v10  ;;  %v803_v2 = vcvt.s32.f32 %v797_v34  ;;  %v801_v13 = vadd.s32 48, %v1331_v10  ;;  %v802_v23 = vadd.s32 56, %v1331_v10 }
 0x94e   : > { %v747_v35 = vadd.f32 %v743_v25, %v719_v31  ;;  %v748_v52 = vadd.f32 %v744_v21, %v720_v8  ;;  %v804_v12 = vcvt.s32.f32 %v798_v59  ;;  %v805_v22 = vcvt.s32.f32 %v799_v1 }
 0x94f   : > { %v806_v14 = vcvt.s32.f32 %v800_v62  ;;  %v1275_v61 = vmov 1.0|1.0   ;;  %v807_v43 = vcvt.s32.f32 %v801_v13  ;;  %v969_v31 = vrot.slane %v1375_v36, 4 }
 0x950   : > { %v925_v8 = vrot.slane %v1388_v42, 4 }
 0x9b0   : > { %v760_v24 = vpop.xlane.xlu1 %759  ;;  %v757_v63 = vpop.xlane.xlu0 %756 }
 0x9b1   : > { %vm762_vm11 = vcmp.lt.f32.partialorder %v760_v24, 64.0  ;;  %vm761_vm12 = vcmp.lt.f32.partialorder %v757_v63, 64.0 }
 0x9b2   : > { %v764_v30 = vsel %vm762_vm11, %v760_v24, %v1541_v41  ;;  %v763_v0 = vsel %vm761_vm12, %v757_v63, %v1550_v7  ;;  %v808_v24 = vcvt.s32.f32 %v802_v23 }
 0x9b3   : > { %v773_v29 = vsel %vm765_vm6, %v764_v30, 0.0  ;;  %v774_v9 = vsel %vm766_vm10, %v764_v30, 0.0  ;;  %v771_v6 = vsel %vm765_vm6, %v763_v0, 0.0  ;;  %v772_v41 = vsel %vm766_vm10, %v763_v0, 0.0 }
 0x9b4   : > { %v777_v28 = vadd.f32 %v773_v29, %v749_v50  ;;  %v778_v45 = vadd.f32 %v774_v9, %v750_v26  ;;  %v775_v56 = vadd.f32 %v771_v6, %v747_v35  ;;  %v776_v32 = vadd.f32 %v772_v41, %v748_v52 }
 0x9b5   : > { %v932_v9 = vrot.slane %v1390_v44, 4 }
 0x9b6   : > { %v781_v46 = vsel %vm1837_vm2, %v777_v28, 0.0  ;;  %v782_v51 = vsel %vm1835_vm3, %v778_v45, 0.0  ;;  %v779_v7 = vsel %vm1836_vm0, %v775_v56, 0.0  ;;  %v780_v33 = vsel %vm1834_vm1, %v776_v32, 0.0 }
 0x9b7   : > { %v783_v38 = vadd.f32 %v781_v46, %v779_v7  ;;  %v790_v58 = vadd.f32 %v782_v51, %v780_v33 }
 0x9b9   : > { %v784_v11 = vrot.slane %v783_v38, 4  ;;  %v791_v39 = vrot.slane %v790_v58, 4 }
 0x9bb   : > { %v785_v54 = vadd.f32 %v784_v11, %v783_v38  ;;  %v792_v49 = vadd.f32 %v791_v39, %v790_v58 }
 0x9bd   : > { %v786_v55 = vrot.slane %v785_v54, 2  ;;  %v793_v16 = vrot.slane %v792_v49, 2 }
 0x9bf   : > { %v787_v57 = vadd.f32 %v786_v55, %v785_v54  ;;  %v794_v60 = vadd.f32 %v793_v16, %v792_v49 }
 0x9c1   : > { %v788_v3 = vrot.slane %v787_v57, 1  ;;  %v795_v53 = vrot.slane %v794_v60, 1 }
 0x9c3   : > { %v789_v40 = vadd.f32 %v788_v3, %v787_v57  ;;  %v796_v4 = vadd.f32 %v795_v53, %v794_v60 }
 0x9c5   : > { %vm810_vm13 = vcmp.eq.f32.partialorder %v1347_v19, %v796_v4  ;;  %vm812_vm14 = vcmp.eq.f32.partialorder %v1349_v20, %v796_v4  ;;  %vm809_vm15 = vcmp.eq.f32.partialorder %v1347_v19, %v789_v40  ;;  %vm811_vm7 = vcmp.eq.f32.partialorder %v1349_v20, %v789_v40 }
 0x9c6   : > { %vm1190_vm8 = vmpackc.low %vm812_vm14, %vm810_vm13  ;;  %vm814_vm5 = vcmp.eq.f32.partialorder %v803_v2, %v796_v4  ;;  %vm816_vm9 = vcmp.eq.f32.partialorder %v804_v12, %v796_v4  ;;  %vm813_vm11 = vcmp.eq.f32.partialorder %v803_v2, %v789_v40  ;;  %vm815_vm12 = vcmp.eq.f32.partialorder %v804_v12, %v789_v40 }
 0x9c7   : > { %1191 = vmatprep.subr.msk.bf16.mxu0 %vm1190_vm8, %v1275_v61  ;;  %vm1192_vm6 = vmpackc.low %vm811_vm7, %vm809_vm15  ;;  %vm818_vm1 = vcmp.eq.f32.partialorder %v805_v22, %v796_v4  ;;  %vm820_vm3 = vcmp.eq.f32.partialorder %v806_v14, %v796_v4  ;;  %vm817_vm4 = vcmp.eq.f32.partialorder %v805_v22, %v789_v40  ;;  %vm819_vm13 = vcmp.eq.f32.partialorder %v806_v14, %v789_v40 }
 0x9c8   : > { %1193 = vmatpush1.bf16.msk.msra.mxu0 %vm1192_vm6, %v1275_v61  ;;  %vm1194_vm10 = vmpackc.low %vm816_vm9, %vm814_vm5  ;;  %vm822_vm14 = vcmp.eq.f32.partialorder %v807_v43, %v796_v4  ;;  %vm824_vm8 = vcmp.eq.f32.partialorder %v808_v24, %v796_v4  ;;  %vm821_vm5 = vcmp.eq.f32.partialorder %v807_v43, %v789_v40  ;;  %vm823_vm9 = vcmp.eq.f32.partialorder %v808_v24, %v789_v40 }
 0x9c9   : > { %1195 = vmatprep.subr.msk.bf16.mxu0 %vm1194_vm10, %v1275_v61  ;;  %vm1196_vm0 = vmpackc.low %vm815_vm12, %vm813_vm11  ;;  %vm1839_vm10 = vcmask 523264  }
 0x9ca   : > { %vm1198_vm2 = vmpackc.low %vm820_vm3, %vm818_vm1  ;;  %vm1841_vm1 = vcmp.eq.f32.partialorder %v1342_v17, %v1347_v19  ;;  %vm1843_vm3 = vcmp.eq.f32.partialorder %v1344_v18, %v1347_v19  ;;  %v933_v19 = vadd.f32 %v932_v9, %v1390_v44 }
 0x9cb   : > { %vm1200_vm7 = vmpackc.low %vm819_vm13, %vm817_vm4  ;;  %v1006_v50 = vsel %vm1841_vm1, %v1394_v48, 0.0  ;;  %v1007_v25 = vsel %vm1843_vm3, %v1394_v48, 0.0  ;;  %vm960_vm4 = vcmp.lt.s32.totalorder %v261_v5, 256 }
 0x9cc   : > { %1197 = vmatpush1.bf16.msk.msra.mxu0 %vm1196_vm0, %v1275_v61  ;;  %vm1202_vm15 = vmpackc.low %vm824_vm8, %vm822_vm14  ;;  %vm1840_vm0 = vcmp.eq.f32.partialorder %v1342_v17, %v1349_v20  ;;  %v976_v17 = vrot.slane %v1377_v37, 4  ;;  %v934_v6 = vrot.slane %v933_v19, 2 }
 0x9cd   : > { %1199 = vmatprep.subr.msk.bf16.mxu0 %vm1198_vm2, %v1275_v61  ;;  %vm1204_vm6 = vmpackc.low %vm823_vm9, %vm821_vm5  ;;  %v1008_v15 = vsel %vm1840_vm0, %v1392_v47, 0.0  ;;  %vm1842_vm2 = vcmp.eq.f32.partialorder %v1344_v18, %v1349_v20  ;;  %v970_v20 = vadd.f32 %v969_v31, %v1375_v36 }
 0x9ce   : > { %v1009_v26 = vsel %vm1842_vm2, %v1392_v47, 0.0  ;;  %v1010_v21 = vadd.f32 %v1008_v15, %v1006_v50  ;;  %v926_v47 = vadd.f32 %v925_v8, %v1388_v42  ;;  %v977_v18 = vadd.f32 %v976_v17, %v1377_v37 }
 0x9cf   : > { %v1017_v30 = vadd.f32 %v1009_v26, %v1007_v25  ;;  %v971_v45 = vrot.slane %v970_v20, 2  ;;  %v935_v36 = vadd.f32 %v934_v6, %v933_v19  ;;  %v1276_v42 = vmov 1966171168  }
 0x9d0   : > { %1201 = vmatpush1.bf16.msk.msra.mxu0 %vm1200_vm7, %v1275_v61  ;;  %v1011_v29 = vrot.slane %v1010_v21, 4  ;;  %v927_v35 = vrot.slane %v926_v47, 2  ;;  %v978_v0 = vrot.slane %v977_v18, 2  ;;  %v944_v33 = vunpack.c.l.s4 %v1276_v42 }
 0x9d1   : > { %1203 = vmatprep.subr.msk.bf16.mxu0 %vm1202_vm15, %v1275_v61  ;;  %v1018_v63 = vrot.slane %v1017_v30, 4  ;;  %v972_v46 = vadd.f32 %v971_v45, %v970_v20  ;;  %v936_v11 = vrot.slane %v935_v36, 1 }
 0x9d2   : > { %v1012_v28 = vadd.f32 %v1011_v29, %v1010_v21  ;;  %v928_v51 = vadd.f32 %v927_v35, %v926_v47  ;;  %v979_v32 = vadd.f32 %v978_v0, %v977_v18  ;;  %v945_v16 = vunpack.c.0.s8 %v944_v33 }
 0x9d3   : > { %v1019_v48 = vadd.f32 %v1018_v63, %v1017_v30  ;;  %v973_v38 = vrot.slane %v972_v46, 1  ;;  %v937_v3 = vadd.f32 %v936_v11, %v935_v36 }
 0x9d4   : > { %1205 = vmatpush1.bf16.msk.msra.mxu0 %vm1204_vm6, %v1275_v61  ;;  %v1013_v52 = vrot.slane %v1012_v28, 2  ;;  %v929_v37 = vrot.slane %v928_v51, 1  ;;  %v980_v44 = vrot.slane %v979_v32, 1  ;;  %v948_v14 = vsub.s32 %v945_v16, %v1331_v10 }
 0x9d5   : > { %v1020_v41 = vrot.slane %v1019_v48, 2  ;;  %v974_v57 = vadd.f32 %v973_v38, %v972_v46 }
 0x9d6   : > { %v1014_v56 = vadd.f32 %v1013_v52, %v1012_v28  ;;  %v930_v59 = vadd.f32 %v929_v37, %v928_v51  ;;  %v981_v53 = vadd.f32 %v980_v44, %v979_v32 }
 0x9d7   : > { %1206 = vmatmul.mubr.msk.bf16.vlgmr.msra.gmra.mrb[0].mxu0 %vm1839_vm10, %v1247_v27  ;;  %v1021_v7 = vadd.f32 %v1020_v41, %v1019_v48 }
 0x9d8   : > { %v1015_v58 = vrot.slane %v1014_v56, 1 }
 0x9d9   : > { %v1022_v39 = vrot.slane %v1021_v7, 1 }
 0x9da   : > { %v1016_v60 = vadd.f32 %v1015_v58, %v1014_v56 }
 0x9db   : > { %v1023_v2 = vadd.f32 %v1022_v39, %v1021_v7 }
 0xaaa   : > { %v909_v54 = vpop.f32.mrb[0].mxu0 }
 0xaab   : > { %v911_v49 = vpop.f32.mrb[1].mxu0 }
 0xaac   : > { %v913_v55 = vpop.f32.mrb[2].mxu0 }
 0xaad   : > { %v918_v34 = vadd.f32 %v913_v55, %v909_v54  ;;  %v915_v1 = vpop.f32.mrb[3].mxu0 }
 0xaae   : > { %v919_v62 = vadd.f32 %v915_v1, %v911_v49 }
 0xaaf   : > { %v938_v12 = vsub.f32 %v918_v34, %v930_v59  ;;  %v982_v40 = vsub.f32 %v918_v34, %v974_v57  ;;  %v1024_v4 = vsub.f32 %v918_v34, %v1016_v60  ;;  %1048 = vst [vmem:[%s1812_s30] sm:$0x78] %v918_v34 }
 0xab0   : > { %v939_v22 = vsub.f32 %v919_v62, %v937_v3  ;;  %v983_v13 = vsub.f32 %v919_v62, %v981_v53  ;;  %v1025_v23 = vsub.f32 %v919_v62, %v1023_v2  ;;  %1049 = vst [vmem:[%s1812_s30 + $0x8] sm:$0x78] %v919_v62 }
 0xab2   : > { %v942_v61 = vcombine.low %v938_v12, %v939_v22  ;;  %v986_v43 = vcombine.low %v982_v40, %v983_v13  ;;  %v1028_v24 = vcombine.low %v1024_v4, %v1025_v23 }
 0xab4   : > { %v949_v27 = vrot.slane %v942_v61, %v948_v14  ;;  %v993_v15 = vrot.slane %v986_v43, %v948_v14  ;;  %v1035_v50 = vrot.slane %v1028_v24, %v948_v14 }
 0xab6   : > { %v956_v26 = vrot.slane %v949_v27, %v948_v14  ;;  %v994_v25 = vcombine.high %v993_v15, %v993_v15  ;;  %v1042_v21 = vrot.slane %v1035_v50, %v948_v14 }
 0xab8   : > { %962 = vst.msk [vmem:[%s1812_s30] ss:$8 sm:$0x3] %vm960_vm4, %v956_v26  ;;  %v1001_v30 = vrot.slane %v994_v25, %v948_v14  ;;  %v1043_v31 = vcombine.high %v1042_v21, %v1042_v21 }
 0xaba   : > { %1207 = vst.msk [vmem:[%s1812_s30 + $0x1] ss:$8 sm:$0x3] %vm960_vm4, %v1001_v30  ;;  %1208 = vst.msk [vmem:[%s1812_s30 + $0x2] ss:$8 sm:$0x3] %vm960_vm4, %v1043_v31 }
 0xabb PF: > { %s13_s14 = sadd.s32 1, %s1270_s14   ;;  %s1844_s12 = smov %s1266_s13 }
 0xabc   : > { %p10_p5 = scmp.ge.s32.totalorder %s13_s14, 4   ;;  %s1845_s13 = smov %s1847_s15 }
 0xabe   :  { %12 = sbr.rel (!%p10_p5) target bundleno = 2 (0x2), region = 70 }

</bundles_post_ra>
